<compile_context>
chip_gen: v7x
topology: tpu7x:2x2x1
jax: 0.10.0
libtpu: 0.0.40
codegen_flags: <defaults>
</compile_context>

<pallas_src>
import jax
import jax.numpy as jnp
from jax import lax
from jax.experimental import pallas as pl
from jax.experimental.pallas import tpu as pltpu

# ------------------------- configuration (small, synthetic) -------------------------
B, C, W, H = 2, 32, 4, 4          # c1 == c2 == C  -> conv branch disabled
NUM_HEADS = 4
NUM_LAYERS = 2
S = W * H                         # tokens per batch element (one grid program each)
HEAD_DIM = C // NUM_HEADS


# ------------------------------------ kernel ---------------------------------------
def transformer_block_kernel(p_ref, lin_w_ref, lin_b_ref,
                             wqkv_ref, bqkv_ref, wo_ref, ob_ref, wff_ref, o_ref):
    p = p_ref[...]                                                  # (S, C) f32

    # x = p + self.linear(p)       (weight pre-transposed + bf16, bias f32)
    x = p + jnp.dot(p.astype(jnp.bfloat16), lin_w_ref[...],
                    preferred_element_type=jnp.float32) + lin_b_ref[...]

    for l in range(NUM_LAYERS):                                     # static unroll (2)
        xb = x.astype(jnp.bfloat16)

        # One lane-dense matmul for all heads' fused Q/K/V (1/sqrt(D) folded into Q).
        qkv = jnp.dot(xb, wqkv_ref[l],
                      preferred_element_type=jnp.float32) + bqkv_ref[l]          # (S, 3C)

        # Per-head scores, stacked along sublanes -> one softmax for all heads.
        sc_list = []
        for h in range(NUM_HEADS):                                  # static unroll (4)
            qh = qkv[:, h * HEAD_DIM:(h + 1) * HEAD_DIM]                          # (S, D)
            kh = qkv[:, C + h * HEAD_DIM: C + (h + 1) * HEAD_DIM]                 # (S, D)
            sc_list.append(lax.dot_general(qh, kh, (((1,), (1,)), ((), ())),
                                           preferred_element_type=jnp.float32))   # (S, S)
        sc = jnp.concatenate(sc_list, axis=0)                                     # (H*S, S)

        sc = sc - jnp.max(sc, axis=-1, keepdims=True)
        e = jnp.exp(sc)
        attn = e * pl.reciprocal(jnp.sum(e, axis=-1, keepdims=True), approx=True)

        # Per-head attention-weighted values, concatenated back along lanes.
        o_list = []
        for h in range(NUM_HEADS):
            vh = qkv[:, 2 * C + h * HEAD_DIM: 2 * C + (h + 1) * HEAD_DIM]         # (S, D)
            ah = attn[h * S:(h + 1) * S, :]                                       # (S, S)
            o_list.append(jnp.dot(ah, vh, preferred_element_type=jnp.float32))    # (S, D)
        o = jnp.concatenate(o_list, axis=-1)                                      # (S, C)

        # Single concatenated out_proj matmul + attention residual.
        x = x + jnp.dot(o.astype(jnp.bfloat16), wo_ref[l],
                        preferred_element_type=jnp.float32) + ob_ref[l]

        # fused fc2(fc1(x)) + x   (single pre-combined, pre-transposed bf16 weight)
        x = x + jnp.dot(x.astype(jnp.bfloat16), wff_ref[l],
                        preferred_element_type=jnp.float32)

    o_ref[...] = x.astype(o_ref.dtype)


# ------------------------- wrapper-side weight preparation ---------------------------
def _prep_params(params):
    (lin_w, lin_b, q_w, k_w, v_w, in_w, in_b, out_w, out_b, fc1_w, fc2_w) = params
    scale = 1.0 / (HEAD_DIM ** 0.5)

    lin_wt = lin_w.T.astype(jnp.bfloat16)                           # (C, C)

    # fuse q/k/v linear with the packed in_proj:  q = x @ (in_w[:C] @ q_w).T + b_q
    wq = jnp.einsum('lab,lbc->lac', in_w[:, :C, :], q_w)            # (L, C, C)  (out,in)
    wk = jnp.einsum('lab,lbc->lac', in_w[:, C:2 * C, :], k_w)
    wv = jnp.einsum('lab,lbc->lac', in_w[:, 2 * C:, :], v_w)

    # pack right-multipliers as one (L, C, 3C) weight; fold 1/sqrt(D) into Q slice
    wqkv = jnp.concatenate([jnp.transpose(wq, (0, 2, 1)) * scale,
                            jnp.transpose(wk, (0, 2, 1)),
                            jnp.transpose(wv, (0, 2, 1))], axis=-1).astype(jnp.bfloat16)
    bqkv = jnp.concatenate([in_b[:, :, :C] * scale,
                            in_b[:, :, C:2 * C],
                            in_b[:, :, 2 * C:]], axis=-1).astype(jnp.float32)   # (L, 1, 3C)

    # unsplit out_proj right-multiplier: (L, C, C)
    wo = jnp.transpose(out_w, (0, 2, 1)).astype(jnp.bfloat16)
    ob = out_b.astype(jnp.float32)                                  # (L, 1, C)

    # fuse fc1/fc2 (no activation between them):  x @ fc1.T @ fc2.T = x @ (fc2 @ fc1).T
    wff = jnp.transpose(jnp.einsum('lab,lbc->lac', fc2_w, fc1_w),
                        (0, 2, 1)).astype(jnp.bfloat16)             # (L, C, C)

    return (lin_wt, lin_b.astype(jnp.float32), wqkv, bqkv, wo, ob, wff)


# ----------------------------------- wrapper ----------------------------------------
def transformer_block(x_nchw, params):
    b, c, w, h = x_nchw.shape
    assert c == C and w * h == S and b == B
    # NCHW -> (B*S, C) token slab; one grid program per batch element (no mask needed)
    p = x_nchw.reshape(b, c, w * h).transpose(0, 2, 1).reshape(b * S, C)

    prepped = _prep_params(params)

    def rep(a):                                  # replicate small weights to every program
        nd = a.ndim
        return pl.BlockSpec(a.shape, lambda i, _n=nd: (0,) * _n)

    in_specs = [pl.BlockSpec((S, C), lambda i: (i, 0))] + [rep(a) for a in prepped]

    out = pl.pallas_call(
        transformer_block_kernel,
        out_shape=jax.ShapeDtypeStruct((b * S, C), jnp.float32),
        grid=(b,),                                                  # one program per batch elem
        in_specs=in_specs,
        out_specs=pl.BlockSpec((S, C), lambda i: (i, 0)),
        compiler_params=pltpu.CompilerParams(
            dimension_semantics=("parallel",)),                     # both TCs on v7x
    )(p, *prepped)

    # (B*S, C) -> NCHW
    return out.reshape(b, w * h, c).transpose(0, 2, 1).reshape(b, c, w, h)


# ----------------------------- pure-JAX reference (f32, unfused) --------------------
def transformer_block_ref(x_nchw, params):
    b, c, w, h = x_nchw.shape
    p = x_nchw.reshape(b, c, w * h).transpose(0, 2, 1)              # (B, S, C)
    (lin_w, lin_b, q_w, k_w, v_w, in_w, in_b, out_w, out_b, fc1_w, fc2_w) = params

    x = p + jnp.einsum('bsc,dc->bsd', p, lin_w) + lin_b[0]
    for l in range(NUM_LAYERS):
        qx = x @ q_w[l].T
        kx = x @ k_w[l].T
        vx = x @ v_w[l].T
        wq, wk, wv = in_w[l][:C], in_w[l][C:2 * C], in_w[l][2 * C:]
        bq, bk, bv = in_b[l][0, :C], in_b[l][0, C:2 * C], in_b[l][0, 2 * C:]
        q = qx @ wq.T + bq
        k = kx @ wk.T + bk
        v = vx @ wv.T + bv
        qh = q.reshape(b, S, NUM_HEADS, HEAD_DIM)
        kh = k.reshape(b, S, NUM_HEADS, HEAD_DIM)
        vh = v.reshape(b, S, NUM_HEADS, HEAD_DIM)
        sc = jnp.einsum('bshd,bthd->bhst', qh, kh) / jnp.sqrt(jnp.float32(HEAD_DIM))
        a = jax.nn.softmax(sc, axis=-1)
        o = jnp.einsum('bhst,bthd->bshd', a, vh).reshape(b, S, C)
        x = o @ out_w[l].T + out_b[l][0] + x
        x = (x @ fc1_w[l].T) @ fc2_w[l].T + x
    return x.transpose(0, 2, 1).reshape(b, c, w, h)


# ------------------------------------- main -----------------------------------------
if __name__ == "__main__":
    key = jax.random.PRNGKey(0)
    ks = jax.random.split(key, 12)
    sc = 0.1
    params = (
        jax.random.normal(ks[0], (C, C), jnp.float32) * sc,                    # linear.weight
        jax.random.normal(ks[1], (1, C), jnp.float32) * sc,                    # linear.bias
        jax.random.normal(ks[2], (NUM_LAYERS, C, C), jnp.float32) * sc,        # q.weight
        jax.random.normal(ks[3], (NUM_LAYERS, C, C), jnp.float32) * sc,        # k.weight
        jax.random.normal(ks[4], (NUM_LAYERS, C, C), jnp.float32) * sc,        # v.weight
        jax.random.normal(ks[5], (NUM_LAYERS, 3 * C, C), jnp.float32) * sc,    # ma.in_proj_weight
        jax.random.normal(ks[6], (NUM_LAYERS, 1, 3 * C), jnp.float32) * sc,    # ma.in_proj_bias
        jax.random.normal(ks[7], (NUM_LAYERS, C, C), jnp.float32) * sc,        # ma.out_proj.weight
        jax.random.normal(ks[8], (NUM_LAYERS, 1, C), jnp.float32) * sc,        # ma.out_proj.bias
        jax.random.normal(ks[9], (NUM_LAYERS, C, C), jnp.float32) * sc,        # fc1.weight
        jax.random.normal(ks[10], (NUM_LAYERS, C, C), jnp.float32) * sc,       # fc2.weight
    )
    x = jax.random.normal(ks[11], (B, C, W, H), jnp.float32)

    out = jax.block_until_ready(transformer_block(x, params))
    ref = jax.block_until_ready(transformer_block_ref(x, params))

    assert out.shape == (B, C, W, H)
    # tolerance accommodates bf16 MXU operands + approx-reciprocal softmax
    assert jnp.allclose(out, ref, atol=3e-2, rtol=3e-2), float(jnp.max(jnp.abs(out - ref)))

    print("KERNEL_OK")
</pallas_src>

<mosaic_0001>
module attributes {stable_mosaic.version = 11 : i64} {
  func.func @transformer_block_kernel(%arg0: i32, %arg1: memref<16x32xf32, #tpu.memory_space<vmem>>, %arg2: memref<32x32xbf16, #tpu.memory_space<vmem>>, %arg3: memref<1x32xf32, #tpu.memory_space<vmem>>, %arg4: memref<2x32x96xbf16, #tpu.memory_space<vmem>>, %arg5: memref<2x1x96xf32, #tpu.memory_space<vmem>>, %arg6: memref<2x32x32xbf16, #tpu.memory_space<vmem>>, %arg7: memref<2x1x32xf32, #tpu.memory_space<vmem>>, %arg8: memref<2x32x32xbf16, #tpu.memory_space<vmem>>, %arg9: memref<16x32xf32, #tpu.memory_space<vmem>>) attributes {dimension_semantics = [#tpu.dimension_semantics<parallel>], iteration_bounds = array<i64: 2>, scalar_prefetch = 0 : i64, scratch_operands = 0 : i64, tpu.core_type = #tpu.core_type<tc>, window_params = [{transform_indices = @transform_0, window_bounds = array<i64: 16, 32>}, {pipeline_mode = #tpu.pipeline_mode<synchronous>, transform_indices = @transform_1, window_bounds = array<i64: 32, 32>}, {pipeline_mode = #tpu.pipeline_mode<synchronous>, transform_indices = @transform_2, window_bounds = array<i64: 1, 32>}, {pipeline_mode = #tpu.pipeline_mode<synchronous>, transform_indices = @transform_3, window_bounds = array<i64: 2, 32, 96>}, {pipeline_mode = #tpu.pipeline_mode<synchronous>, transform_indices = @transform_4, window_bounds = array<i64: 2, 1, 96>}, {pipeline_mode = #tpu.pipeline_mode<synchronous>, transform_indices = @transform_5, window_bounds = array<i64: 2, 32, 32>}, {pipeline_mode = #tpu.pipeline_mode<synchronous>, transform_indices = @transform_6, window_bounds = array<i64: 2, 1, 32>}, {pipeline_mode = #tpu.pipeline_mode<synchronous>, transform_indices = @transform_7, window_bounds = array<i64: 2, 32, 32>}, {transform_indices = @transform_8, window_bounds = array<i64: 16, 32>}]} {
    %c0 = arith.constant 0 : index
    %c0_0 = arith.constant 0 : index
    %0 = vector.load %arg1[%c0, %c0_0] : memref<16x32xf32, #tpu.memory_space<vmem>>, vector<16x32xf32>
    %1 = arith.truncf %0 : vector<16x32xf32> to vector<16x32xbf16>
    %c0_1 = arith.constant 0 : index
    %c0_2 = arith.constant 0 : index
    %2 = vector.load %arg2[%c0_1, %c0_2] : memref<32x32xbf16, #tpu.memory_space<vmem>>, vector<32x32xbf16>
    %cst = arith.constant dense<0.000000e+00> : vector<16x32xf32>
    %3 = tpu.matmul %1, %2, %cst {dimension_numbers = #tpu.dot_dimension_numbers<[1], [0], [0], [1], [0, 0, 1, 1], [], []>} : vector<16x32xbf16>, vector<32x32xbf16>, vector<16x32xf32> -> vector<16x32xf32>
    %4 = arith.addf %0, %3 : vector<16x32xf32>
    %c0_3 = arith.constant 0 : index
    %c0_4 = arith.constant 0 : index
    %5 = vector.load %arg3[%c0_3, %c0_4] : memref<1x32xf32, #tpu.memory_space<vmem>>, vector<1x32xf32>
    %6 = vector.broadcast %5 : vector<1x32xf32> to vector<16x32xf32>
    %7 = arith.addf %4, %6 : vector<16x32xf32>
    %8 = arith.truncf %7 : vector<16x32xf32> to vector<16x32xbf16>
    %c0_5 = arith.constant 0 : index
    %c0_6 = arith.constant 0 : index
    %c0_7 = arith.constant 0 : index
    %9 = vector.load %arg4[%c0_5, %c0_6, %c0_7] : memref<2x32x96xbf16, #tpu.memory_space<vmem>>, vector<1x32x96xbf16>
    %10 = vector.shape_cast %9 : vector<1x32x96xbf16> to vector<32x96xbf16>
    %cst_8 = arith.constant dense<0.000000e+00> : vector<16x96xf32>
    %11 = tpu.matmul %8, %10, %cst_8 {dimension_numbers = #tpu.dot_dimension_numbers<[1], [0], [0], [1], [0, 0, 1, 1], [], []>} : vector<16x32xbf16>, vector<32x96xbf16>, vector<16x96xf32> -> vector<16x96xf32>
    %c0_9 = arith.constant 0 : index
    %c0_10 = arith.constant 0 : index
    %c0_11 = arith.constant 0 : index
    %12 = vector.load %arg5[%c0_9, %c0_10, %c0_11] : memref<2x1x96xf32, #tpu.memory_space<vmem>>, vector<1x1x96xf32>
    %13 = vector.shape_cast %12 : vector<1x1x96xf32> to vector<1x96xf32>
    %14 = vector.broadcast %13 : vector<1x96xf32> to vector<16x96xf32>
    %15 = arith.addf %11, %14 : vector<16x96xf32>
    %16 = vector.extract_strided_slice %15 {offsets = [0, 0], sizes = [16, 8], strides = [1, 1]} : vector<16x96xf32> to vector<16x8xf32>
    %17 = vector.extract_strided_slice %15 {offsets = [0, 32], sizes = [16, 8], strides = [1, 1]} : vector<16x96xf32> to vector<16x8xf32>
    %cst_12 = arith.constant dense<0.000000e+00> : vector<16x16xf32>
    %18 = tpu.matmul %16, %17, %cst_12 {dimension_numbers = #tpu.dot_dimension_numbers<[1], [1], [0], [0], [0, 0, 1, 0], [], []>} : vector<16x8xf32>, vector<16x8xf32>, vector<16x16xf32> -> vector<16x16xf32>
    %19 = vector.extract_strided_slice %15 {offsets = [0, 8], sizes = [16, 8], strides = [1, 1]} : vector<16x96xf32> to vector<16x8xf32>
    %20 = vector.extract_strided_slice %15 {offsets = [0, 40], sizes = [16, 8], strides = [1, 1]} : vector<16x96xf32> to vector<16x8xf32>
    %cst_13 = arith.constant dense<0.000000e+00> : vector<16x16xf32>
    %21 = tpu.matmul %19, %20, %cst_13 {dimension_numbers = #tpu.dot_dimension_numbers<[1], [1], [0], [0], [0, 0, 1, 0], [], []>} : vector<16x8xf32>, vector<16x8xf32>, vector<16x16xf32> -> vector<16x16xf32>
    %22 = vector.extract_strided_slice %15 {offsets = [0, 16], sizes = [16, 8], strides = [1, 1]} : vector<16x96xf32> to vector<16x8xf32>
    %23 = vector.extract_strided_slice %15 {offsets = [0, 48], sizes = [16, 8], strides = [1, 1]} : vector<16x96xf32> to vector<16x8xf32>
    %cst_14 = arith.constant dense<0.000000e+00> : vector<16x16xf32>
    %24 = tpu.matmul %22, %23, %cst_14 {dimension_numbers = #tpu.dot_dimension_numbers<[1], [1], [0], [0], [0, 0, 1, 0], [], []>} : vector<16x8xf32>, vector<16x8xf32>, vector<16x16xf32> -> vector<16x16xf32>
    %25 = vector.extract_strided_slice %15 {offsets = [0, 24], sizes = [16, 8], strides = [1, 1]} : vector<16x96xf32> to vector<16x8xf32>
    %26 = vector.extract_strided_slice %15 {offsets = [0, 56], sizes = [16, 8], strides = [1, 1]} : vector<16x96xf32> to vector<16x8xf32>
    %cst_15 = arith.constant dense<0.000000e+00> : vector<16x16xf32>
    %27 = tpu.matmul %25, %26, %cst_15 {dimension_numbers = #tpu.dot_dimension_numbers<[1], [1], [0], [0], [0, 0, 1, 0], [], []>} : vector<16x8xf32>, vector<16x8xf32>, vector<16x16xf32> -> vector<16x16xf32>
    %28 = tpu.concatenate %18, %21, %24, %27 in 0 : vector<16x16xf32>, vector<16x16xf32>, vector<16x16xf32>, vector<16x16xf32> -> vector<64x16xf32>
    %cst_16 = arith.constant dense<0xFF800000> : vector<64xf32>
    %29 = vector.multi_reduction <maximumf>, %28, %cst_16 [1] : vector<64x16xf32> to vector<64xf32>
    %30 = vector.shape_cast %29 : vector<64xf32> to vector<64x1xf32>
    %31 = vector.broadcast %30 : vector<64x1xf32> to vector<64x16xf32>
    %32 = arith.subf %28, %31 : vector<64x16xf32>
    %33 = math.exp %32 : vector<64x16xf32>
    %cst_17 = arith.constant dense<0.000000e+00> : vector<64xf32>
    %34 = vector.multi_reduction <add>, %33, %cst_17 [1] : vector<64x16xf32> to vector<64xf32>
    %35 = vector.shape_cast %34 : vector<64xf32> to vector<64x1xf32>
    %36 = tpu.reciprocal %35 {approx = true} : vector<64x1xf32> -> vector<64x1xf32>
    %37 = vector.broadcast %36 : vector<64x1xf32> to vector<64x16xf32>
    %38 = arith.mulf %33, %37 : vector<64x16xf32>
    %39 = vector.extract_strided_slice %15 {offsets = [0, 64], sizes = [16, 8], strides = [1, 1]} : vector<16x96xf32> to vector<16x8xf32>
    %40 = vector.extract_strided_slice %38 {offsets = [0, 0], sizes = [16, 16], strides = [1, 1]} : vector<64x16xf32> to vector<16x16xf32>
    %cst_18 = arith.constant dense<0.000000e+00> : vector<16x8xf32>
    %41 = tpu.matmul %40, %39, %cst_18 {dimension_numbers = #tpu.dot_dimension_numbers<[1], [0], [0], [1], [0, 0, 1, 1], [], []>} : vector<16x16xf32>, vector<16x8xf32>, vector<16x8xf32> -> vector<16x8xf32>
    %42 = vector.extract_strided_slice %15 {offsets = [0, 72], sizes = [16, 8], strides = [1, 1]} : vector<16x96xf32> to vector<16x8xf32>
    %43 = vector.extract_strided_slice %38 {offsets = [16, 0], sizes = [16, 16], strides = [1, 1]} : vector<64x16xf32> to vector<16x16xf32>
    %cst_19 = arith.constant dense<0.000000e+00> : vector<16x8xf32>
    %44 = tpu.matmul %43, %42, %cst_19 {dimension_numbers = #tpu.dot_dimension_numbers<[1], [0], [0], [1], [0, 0, 1, 1], [], []>} : vector<16x16xf32>, vector<16x8xf32>, vector<16x8xf32> -> vector<16x8xf32>
    %45 = vector.extract_strided_slice %15 {offsets = [0, 80], sizes = [16, 8], strides = [1, 1]} : vector<16x96xf32> to vector<16x8xf32>
    %46 = vector.extract_strided_slice %38 {offsets = [32, 0], sizes = [16, 16], strides = [1, 1]} : vector<64x16xf32> to vector<16x16xf32>
    %cst_20 = arith.constant dense<0.000000e+00> : vector<16x8xf32>
    %47 = tpu.matmul %46, %45, %cst_20 {dimension_numbers = #tpu.dot_dimension_numbers<[1], [0], [0], [1], [0, 0, 1, 1], [], []>} : vector<16x16xf32>, vector<16x8xf32>, vector<16x8xf32> -> vector<16x8xf32>
    %48 = vector.extract_strided_slice %15 {offsets = [0, 88], sizes = [16, 8], strides = [1, 1]} : vector<16x96xf32> to vector<16x8xf32>
    %49 = vector.extract_strided_slice %38 {offsets = [48, 0], sizes = [16, 16], strides = [1, 1]} : vector<64x16xf32> to vector<16x16xf32>
    %cst_21 = arith.constant dense<0.000000e+00> : vector<16x8xf32>
    %50 = tpu.matmul %49, %48, %cst_21 {dimension_numbers = #tpu.dot_dimension_numbers<[1], [0], [0], [1], [0, 0, 1, 1], [], []>} : vector<16x16xf32>, vector<16x8xf32>, vector<16x8xf32> -> vector<16x8xf32>
    %51 = tpu.concatenate %41, %44, %47, %50 in 1 : vector<16x8xf32>, vector<16x8xf32>, vector<16x8xf32>, vector<16x8xf32> -> vector<16x32xf32>
    %52 = arith.truncf %51 : vector<16x32xf32> to vector<16x32xbf16>
    %c0_22 = arith.constant 0 : index
    %c0_23 = arith.constant 0 : index
    %c0_24 = arith.constant 0 : index
    %53 = vector.load %arg6[%c0_22, %c0_23, %c0_24] : memref<2x32x32xbf16, #tpu.memory_space<vmem>>, vector<1x32x32xbf16>
    %54 = vector.shape_cast %53 : vector<1x32x32xbf16> to vector<32x32xbf16>
    %cst_25 = arith.constant dense<0.000000e+00> : vector<16x32xf32>
    %55 = tpu.matmul %52, %54, %cst_25 {dimension_numbers = #tpu.dot_dimension_numbers<[1], [0], [0], [1], [0, 0, 1, 1], [], []>} : vector<16x32xbf16>, vector<32x32xbf16>, vector<16x32xf32> -> vector<16x32xf32>
    %56 = arith.addf %7, %55 : vector<16x32xf32>
    %c0_26 = arith.constant 0 : index
    %c0_27 = arith.constant 0 : index
    %c0_28 = arith.constant 0 : index
    %57 = vector.load %arg7[%c0_26, %c0_27, %c0_28] : memref<2x1x32xf32, #tpu.memory_space<vmem>>, vector<1x1x32xf32>
    %58 = vector.shape_cast %57 : vector<1x1x32xf32> to vector<1x32xf32>
    %59 = vector.broadcast %58 : vector<1x32xf32> to vector<16x32xf32>
    %60 = arith.addf %56, %59 : vector<16x32xf32>
    %61 = arith.truncf %60 : vector<16x32xf32> to vector<16x32xbf16>
    %c0_29 = arith.constant 0 : index
    %c0_30 = arith.constant 0 : index
    %c0_31 = arith.constant 0 : index
    %62 = vector.load %arg8[%c0_29, %c0_30, %c0_31] : memref<2x32x32xbf16, #tpu.memory_space<vmem>>, vector<1x32x32xbf16>
    %63 = vector.shape_cast %62 : vector<1x32x32xbf16> to vector<32x32xbf16>
    %cst_32 = arith.constant dense<0.000000e+00> : vector<16x32xf32>
    %64 = tpu.matmul %61, %63, %cst_32 {dimension_numbers = #tpu.dot_dimension_numbers<[1], [0], [0], [1], [0, 0, 1, 1], [], []>} : vector<16x32xbf16>, vector<32x32xbf16>, vector<16x32xf32> -> vector<16x32xf32>
    %65 = arith.addf %60, %64 : vector<16x32xf32>
    %66 = arith.truncf %65 : vector<16x32xf32> to vector<16x32xbf16>
    %c1 = arith.constant 1 : index
    %c0_33 = arith.constant 0 : index
    %c0_34 = arith.constant 0 : index
    %67 = vector.load %arg4[%c1, %c0_33, %c0_34] : memref<2x32x96xbf16, #tpu.memory_space<vmem>>, vector<1x32x96xbf16>
    %68 = vector.shape_cast %67 : vector<1x32x96xbf16> to vector<32x96xbf16>
    %cst_35 = arith.constant dense<0.000000e+00> : vector<16x96xf32>
    %69 = tpu.matmul %66, %68, %cst_35 {dimension_numbers = #tpu.dot_dimension_numbers<[1], [0], [0], [1], [0, 0, 1, 1], [], []>} : vector<16x32xbf16>, vector<32x96xbf16>, vector<16x96xf32> -> vector<16x96xf32>
    %c1_36 = arith.constant 1 : index
    %c0_37 = arith.constant 0 : index
    %c0_38 = arith.constant 0 : index
    %70 = vector.load %arg5[%c1_36, %c0_37, %c0_38] : memref<2x1x96xf32, #tpu.memory_space<vmem>>, vector<1x1x96xf32>
    %71 = vector.shape_cast %70 : vector<1x1x96xf32> to vector<1x96xf32>
    %72 = vector.broadcast %71 : vector<1x96xf32> to vector<16x96xf32>
    %73 = arith.addf %69, %72 : vector<16x96xf32>
    %74 = vector.extract_strided_slice %73 {offsets = [0, 0], sizes = [16, 8], strides = [1, 1]} : vector<16x96xf32> to vector<16x8xf32>
    %75 = vector.extract_strided_slice %73 {offsets = [0, 32], sizes = [16, 8], strides = [1, 1]} : vector<16x96xf32> to vector<16x8xf32>
    %cst_39 = arith.constant dense<0.000000e+00> : vector<16x16xf32>
    %76 = tpu.matmul %74, %75, %cst_39 {dimension_numbers = #tpu.dot_dimension_numbers<[1], [1], [0], [0], [0, 0, 1, 0], [], []>} : vector<16x8xf32>, vector<16x8xf32>, vector<16x16xf32> -> vector<16x16xf32>
    %77 = vector.extract_strided_slice %73 {offsets = [0, 8], sizes = [16, 8], strides = [1, 1]} : vector<16x96xf32> to vector<16x8xf32>
    %78 = vector.extract_strided_slice %73 {offsets = [0, 40], sizes = [16, 8], strides = [1, 1]} : vector<16x96xf32> to vector<16x8xf32>
    %cst_40 = arith.constant dense<0.000000e+00> : vector<16x16xf32>
    %79 = tpu.matmul %77, %78, %cst_40 {dimension_numbers = #tpu.dot_dimension_numbers<[1], [1], [0], [0], [0, 0, 1, 0], [], []>} : vector<16x8xf32>, vector<16x8xf32>, vector<16x16xf32> -> vector<16x16xf32>
    %80 = vector.extract_strided_slice %73 {offsets = [0, 16], sizes = [16, 8], strides = [1, 1]} : vector<16x96xf32> to vector<16x8xf32>
    %81 = vector.extract_strided_slice %73 {offsets = [0, 48], sizes = [16, 8], strides = [1, 1]} : vector<16x96xf32> to vector<16x8xf32>
    %cst_41 = arith.constant dense<0.000000e+00> : vector<16x16xf32>
    %82 = tpu.matmul %80, %81, %cst_41 {dimension_numbers = #tpu.dot_dimension_numbers<[1], [1], [0], [0], [0, 0, 1, 0], [], []>} : vector<16x8xf32>, vector<16x8xf32>, vector<16x16xf32> -> vector<16x16xf32>
    %83 = vector.extract_strided_slice %73 {offsets = [0, 24], sizes = [16, 8], strides = [1, 1]} : vector<16x96xf32> to vector<16x8xf32>
    %84 = vector.extract_strided_slice %73 {offsets = [0, 56], sizes = [16, 8], strides = [1, 1]} : vector<16x96xf32> to vector<16x8xf32>
    %cst_42 = arith.constant dense<0.000000e+00> : vector<16x16xf32>
    %85 = tpu.matmul %83, %84, %cst_42 {dimension_numbers = #tpu.dot_dimension_numbers<[1], [1], [0], [0], [0, 0, 1, 0], [], []>} : vector<16x8xf32>, vector<16x8xf32>, vector<16x16xf32> -> vector<16x16xf32>
    %86 = tpu.concatenate %76, %79, %82, %85 in 0 : vector<16x16xf32>, vector<16x16xf32>, vector<16x16xf32>, vector<16x16xf32> -> vector<64x16xf32>
    %cst_43 = arith.constant dense<0xFF800000> : vector<64xf32>
    %87 = vector.multi_reduction <maximumf>, %86, %cst_43 [1] : vector<64x16xf32> to vector<64xf32>
    %88 = vector.shape_cast %87 : vector<64xf32> to vector<64x1xf32>
    %89 = vector.broadcast %88 : vector<64x1xf32> to vector<64x16xf32>
    %90 = arith.subf %86, %89 : vector<64x16xf32>
    %91 = math.exp %90 : vector<64x16xf32>
    %cst_44 = arith.constant dense<0.000000e+00> : vector<64xf32>
    %92 = vector.multi_reduction <add>, %91, %cst_44 [1] : vector<64x16xf32> to vector<64xf32>
    %93 = vector.shape_cast %92 : vector<64xf32> to vector<64x1xf32>
    %94 = tpu.reciprocal %93 {approx = true} : vector<64x1xf32> -> vector<64x1xf32>
    %95 = vector.broadcast %94 : vector<64x1xf32> to vector<64x16xf32>
    %96 = arith.mulf %91, %95 : vector<64x16xf32>
    %97 = vector.extract_strided_slice %73 {offsets = [0, 64], sizes = [16, 8], strides = [1, 1]} : vector<16x96xf32> to vector<16x8xf32>
    %98 = vector.extract_strided_slice %96 {offsets = [0, 0], sizes = [16, 16], strides = [1, 1]} : vector<64x16xf32> to vector<16x16xf32>
    %cst_45 = arith.constant dense<0.000000e+00> : vector<16x8xf32>
    %99 = tpu.matmul %98, %97, %cst_45 {dimension_numbers = #tpu.dot_dimension_numbers<[1], [0], [0], [1], [0, 0, 1, 1], [], []>} : vector<16x16xf32>, vector<16x8xf32>, vector<16x8xf32> -> vector<16x8xf32>
    %100 = vector.extract_strided_slice %73 {offsets = [0, 72], sizes = [16, 8], strides = [1, 1]} : vector<16x96xf32> to vector<16x8xf32>
    %101 = vector.extract_strided_slice %96 {offsets = [16, 0], sizes = [16, 16], strides = [1, 1]} : vector<64x16xf32> to vector<16x16xf32>
    %cst_46 = arith.constant dense<0.000000e+00> : vector<16x8xf32>
    %102 = tpu.matmul %101, %100, %cst_46 {dimension_numbers = #tpu.dot_dimension_numbers<[1], [0], [0], [1], [0, 0, 1, 1], [], []>} : vector<16x16xf32>, vector<16x8xf32>, vector<16x8xf32> -> vector<16x8xf32>
    %103 = vector.extract_strided_slice %73 {offsets = [0, 80], sizes = [16, 8], strides = [1, 1]} : vector<16x96xf32> to vector<16x8xf32>
    %104 = vector.extract_strided_slice %96 {offsets = [32, 0], sizes = [16, 16], strides = [1, 1]} : vector<64x16xf32> to vector<16x16xf32>
    %cst_47 = arith.constant dense<0.000000e+00> : vector<16x8xf32>
    %105 = tpu.matmul %104, %103, %cst_47 {dimension_numbers = #tpu.dot_dimension_numbers<[1], [0], [0], [1], [0, 0, 1, 1], [], []>} : vector<16x16xf32>, vector<16x8xf32>, vector<16x8xf32> -> vector<16x8xf32>
    %106 = vector.extract_strided_slice %73 {offsets = [0, 88], sizes = [16, 8], strides = [1, 1]} : vector<16x96xf32> to vector<16x8xf32>
    %107 = vector.extract_strided_slice %96 {offsets = [48, 0], sizes = [16, 16], strides = [1, 1]} : vector<64x16xf32> to vector<16x16xf32>
    %cst_48 = arith.constant dense<0.000000e+00> : vector<16x8xf32>
    %108 = tpu.matmul %107, %106, %cst_48 {dimension_numbers = #tpu.dot_dimension_numbers<[1], [0], [0], [1], [0, 0, 1, 1], [], []>} : vector<16x16xf32>, vector<16x8xf32>, vector<16x8xf32> -> vector<16x8xf32>
    %109 = tpu.concatenate %99, %102, %105, %108 in 1 : vector<16x8xf32>, vector<16x8xf32>, vector<16x8xf32>, vector<16x8xf32> -> vector<16x32xf32>
    %110 = arith.truncf %109 : vector<16x32xf32> to vector<16x32xbf16>
    %c1_49 = arith.constant 1 : index
    %c0_50 = arith.constant 0 : index
    %c0_51 = arith.constant 0 : index
    %111 = vector.load %arg6[%c1_49, %c0_50, %c0_51] : memref<2x32x32xbf16, #tpu.memory_space<vmem>>, vector<1x32x32xbf16>
    %112 = vector.shape_cast %111 : vector<1x32x32xbf16> to vector<32x32xbf16>
    %cst_52 = arith.constant dense<0.000000e+00> : vector<16x32xf32>
    %113 = tpu.matmul %110, %112, %cst_52 {dimension_numbers = #tpu.dot_dimension_numbers<[1], [0], [0], [1], [0, 0, 1, 1], [], []>} : vector<16x32xbf16>, vector<32x32xbf16>, vector<16x32xf32> -> vector<16x32xf32>
    %114 = arith.addf %65, %113 : vector<16x32xf32>
    %c1_53 = arith.constant 1 : index
    %c0_54 = arith.constant 0 : index
    %c0_55 = arith.constant 0 : index
    %115 = vector.load %arg7[%c1_53, %c0_54, %c0_55] : memref<2x1x32xf32, #tpu.memory_space<vmem>>, vector<1x1x32xf32>
    %116 = vector.shape_cast %115 : vector<1x1x32xf32> to vector<1x32xf32>
    %117 = vector.broadcast %116 : vector<1x32xf32> to vector<16x32xf32>
    %118 = arith.addf %114, %117 : vector<16x32xf32>
    %119 = arith.truncf %118 : vector<16x32xf32> to vector<16x32xbf16>
    %c1_56 = arith.constant 1 : index
    %c0_57 = arith.constant 0 : index
    %c0_58 = arith.constant 0 : index
    %120 = vector.load %arg8[%c1_56, %c0_57, %c0_58] : memref<2x32x32xbf16, #tpu.memory_space<vmem>>, vector<1x32x32xbf16>
    %121 = vector.shape_cast %120 : vector<1x32x32xbf16> to vector<32x32xbf16>
    %cst_59 = arith.constant dense<0.000000e+00> : vector<16x32xf32>
    %122 = tpu.matmul %119, %121, %cst_59 {dimension_numbers = #tpu.dot_dimension_numbers<[1], [0], [0], [1], [0, 0, 1, 1], [], []>} : vector<16x32xbf16>, vector<32x32xbf16>, vector<16x32xf32> -> vector<16x32xf32>
    %123 = arith.addf %118, %122 : vector<16x32xf32>
    %c0_60 = arith.constant 0 : index
    %c0_61 = arith.constant 0 : index
    %124 = vector.load %arg9[%c0_60, %c0_61] : memref<16x32xf32, #tpu.memory_space<vmem>>, vector<16x32xf32>
    tpu.vector_store %arg9[%c0_60, %c0_61], %123 {strides = array<i32>} : memref<16x32xf32, #tpu.memory_space<vmem>>, vector<16x32xf32>,
    return
  }
  func.func @transform_0(%arg0: i32) -> (i32, i32) {
    %c0_i32 = arith.constant 0 : i32
    %c0_i32_0 = arith.constant 0 : i32
    return %arg0, %c0_i32 : i32, i32
  }
  func.func @transform_1(%arg0: i32) -> (i32, i32) {
    %c0_i32 = arith.constant 0 : i32
    %c0_i32_0 = arith.constant 0 : i32
    %c0_i32_1 = arith.constant 0 : i32
    return %c0_i32, %c0_i32_0 : i32, i32
  }
  func.func @transform_2(%arg0: i32) -> (i32, i32) {
    %c0_i32 = arith.constant 0 : i32
    %c0_i32_0 = arith.constant 0 : i32
    %c0_i32_1 = arith.constant 0 : i32
    return %c0_i32, %c0_i32_0 : i32, i32
  }
  func.func @transform_3(%arg0: i32) -> (i32, i32, i32) {
    %c0_i32 = arith.constant 0 : i32
    %c0_i32_0 = arith.constant 0 : i32
    %c0_i32_1 = arith.constant 0 : i32
    %c0_i32_2 = arith.constant 0 : i32
    return %c0_i32, %c0_i32_0, %c0_i32_1 : i32, i32, i32
  }
  func.func @transform_4(%arg0: i32) -> (i32, i32, i32) {
    %c0_i32 = arith.constant 0 : i32
    %c0_i32_0 = arith.constant 0 : i32
    %c0_i32_1 = arith.constant 0 : i32
    %c0_i32_2 = arith.constant 0 : i32
    return %c0_i32, %c0_i32_0, %c0_i32_1 : i32, i32, i32
  }
  func.func @transform_5(%arg0: i32) -> (i32, i32, i32) {
    %c0_i32 = arith.constant 0 : i32
    %c0_i32_0 = arith.constant 0 : i32
    %c0_i32_1 = arith.constant 0 : i32
    %c0_i32_2 = arith.constant 0 : i32
    return %c0_i32, %c0_i32_0, %c0_i32_1 : i32, i32, i32
  }
  func.func @transform_6(%arg0: i32) -> (i32, i32, i32) {
    %c0_i32 = arith.constant 0 : i32
    %c0_i32_0 = arith.constant 0 : i32
    %c0_i32_1 = arith.constant 0 : i32
    %c0_i32_2 = arith.constant 0 : i32
    return %c0_i32, %c0_i32_0, %c0_i32_1 : i32, i32, i32
  }
  func.func @transform_7(%arg0: i32) -> (i32, i32, i32) {
    %c0_i32 = arith.constant 0 : i32
    %c0_i32_0 = arith.constant 0 : i32
    %c0_i32_1 = arith.constant 0 : i32
    %c0_i32_2 = arith.constant 0 : i32
    return %c0_i32, %c0_i32_0, %c0_i32_1 : i32, i32, i32
  }
  func.func @transform_8(%arg0: i32) -> (i32, i32) {
    %c0_i32 = arith.constant 0 : i32
    %c0_i32_0 = arith.constant 0 : i32
    return %arg0, %c0_i32 : i32, i32
  }
}

</mosaic_0001>

<bundles_post_ra>
// kernel: tpu_custom_call.1
= control target key start
LH: loop header
LB: loop body
LE: loop exit
PB: predicated region body
PF: predicated region fallthrough
CT: control target
= control target key end

     0   :  { %13 = vsyncpa [#allocation3], 0  ;;  %s4230_s0 = inlined_call_operand.hbm [shape: f32[32,32], index: 0, kind: input, shape index: {}]   ;;  %s4231_s1 = inlined_call_operand.hbm [shape: bf16[32,32], index: 1, kind: input, shape index: {}]   ;;  %s4232_s2 = inlined_call_operand.vmem [shape: f32[1,32], index: 2, kind: input, shape index: {}]   ;;  %s4233_s3 = inlined_call_operand.hbm [shape: bf16[2,32,96], index: 3, kind: input, shape index: {}]   ;;  %s4234_s4 = inlined_call_operand.vmem [shape: f32[2,1,96], index: 4, kind: input, shape index: {}]   ;;  %s4235_s5 = inlined_call_operand.hbm [shape: bf16[2,32,32], index: 5, kind: input, shape index: {}]   ;;  %s4236_s6 = inlined_call_operand.vmem [shape: f32[2,1,32], index: 6, kind: input, shape index: {}]   ;;  %s4237_s7 = inlined_call_operand.hbm [shape: bf16[2,32,32], index: 7, kind: input, shape index: {}]   ;;  %s4238_s8 = inlined_call_operand.hbm [shape: f32[32,32], index: 8, kind: output, shape index: {}]  }
   0x1   :  { %15 = vsyncpa [#allocation3 + $0x1], 0 }
   0x2   :  { %16 = vsyncpa [#allocation6], 0 }
   0x3   :  { %17 = vsyncpa [#allocation9], 0 }
   0x4   :  { %18 = vsyncpa [#allocation4], 0 }
   0x5   :  { %20 = vsyncpa [#allocation4 + $0x1], 0  ;;  %s3676_s27 = smov 0   ;;  %s3678_s28 = smov 0  }
   0x6   :  { %s3680_s29 = smov 0   ;;  %s3682_s30 = smov 0  }
   0x7 LB: > { %4247 = sst [smem:[#allocation16_spill]] %s3590_s27  ;;  %s3697_s9 = sadd.s32 4294967295, %s3602_s30   ;;  %s3602_s30 = sphi %s3682_s30, %s4275_s30   ;;  %s3598_s29 = sphi %s3680_s29, %s4274_s29   ;;  %s3594_s28 = sphi %s3678_s28, %s4273_s28   ;;  %s3590_s27 = sphi %s3676_s27, %s4272_s27  }
   0x8   : > { %s2657_s10 = sadd.s32 4294967294, %s3602_s30   ;;  %p46_p0 = scmp.ne.s32.totalorder %s3594_s28, %s3590_s27 }
   0x9   : > { %p4239_p1 = scmp.eq.s32.totalorder %s3697_s9, 0  ;;  %p223_p3 = scmp.eq.s32.totalorder %s2657_s10, 1 }
   0xa   : > { %p2658_p5 = scmp.ge.s32.totalorder %s3602_s30, 1  ;;  %p230_p7 = scmp.lt.s32.totalorder %s3602_s30, 3 }
   0xb   : > { %p3706_p4 = por %p4239_p1, %p46_p0  ;;  %p3711_p6 = por %p223_p3, %p46_p0 }
   0xc   : > { %p3716_p8 = pnand %p2658_p5, %p230_p7  ;;  %s3604_s14 = smov [#allocation5]  }
   0xd   : > { %s4248_s11 = scalar_select %p3706_p4, 1, 0 }
   0xe   : > { %s4249_s12 = scalar_select %p3711_p6, 1, 0 }
   0xf   : > { %s4251_s13 = scalar_select %p3716_p8, 1, 0 }
  0x10   : > { %4250 = sst [smem:[#allocation17_spill]] %s4249_s12  ;;  %s242_s15 = sshll.u32 %s3604_s14, 4  ;;  %s3720_s15 = int_to_ptr.vmem [resolvable:$true] %s242_s15 }
  0x11   : > { %p3110_p9 = pneg %p3716_p8  ;;  %s3605_s17 = smov [#allocation8]  }
  0x12   : > { %s274_s18 = sshll.u32 %s3605_s17, 4  ;;  %s3606_s19 = smov [#allocation7]   ;;  %s3731_s18 = int_to_ptr.vmem [resolvable:$true] %s274_s18 }
  0x13   : > { %p3727_p11 = pnand %p3110_p9, %p4239_p1  ;;  %s3733_s20 = sshll.u32 %s3606_s19, 4  ;;  %s259_s20 = int_to_ptr.vmem [resolvable:$true] %s3733_s20 }
  0x14   : > { %s3386_s23 = scalar_lea.hbm %s4231_s1, 256 }
  0x15   : > { %p3387_p12 = scmp.ne.s32.totalorder %s4231_s1, %s3386_s23  ;;  %p3743_p13 = pneg %p3727_p11 }
  0x16   : > { %p3393_p5 = scmp.lt.u32.totalorder %s3386_s23, %s4231_s1 }
  0x17   : > { %p3389_p0 = pnand %p3743_p13, %p3387_p12 }
  0x19   : > { %p3390_p3 = pneg %p3389_p0 }
  0x1b   : > { %p3395_p7 = pnand %p3393_p5, %p3390_p3 }
  0x1d   : > { %3398 = shalt.err (!%p3395_p7)
}
  0x1e   : > { %s3399_s17 = scalar_lea.vmem %s3720_s15, 256  ;;  %p3407_p2 = scmp.lt.s32.totalorder %s3720_s15, %s3720_s15 }
  0x1f   : > { %p3400_p9 = scmp.ne.s32.totalorder %s3720_s15, %s3399_s17  ;;  %p3408_p6 = scmp.lt.s32.totalorder %s3399_s17, %s3399_s17 }
  0x21   : > { %p3402_p10 = pnand %p3400_p9, %p3743_p13  ;;  %p3409_p12 = por %p3408_p6, %p3407_p2 }
  0x23   : > { %p3403_p1 = pneg %p3402_p10 }
  0x25   : > { %p3410_p0 = pnand %p3409_p12, %p3403_p1 }
  0x27   : > { %3413 = shalt.err (!%p3410_p0)
}
  0x28   : > { %s3607_s19 = smov 64   ;;  %s3608_s21 = smov 4  }
  0x29   : > { %3113 = dma.hbm_to_vmem [thread:$0]  (!%p3727_p11), %s4231_s1, 256, %s3720_s15, [#allocation6], %s3607_s19, %s3607_s19, %s3608_s21  }
  0x2a   : > { %s3414_s10 = scalar_lea.hbm %s4235_s5, 512 }
  0x2b   : > { %p3415_p1 = scmp.ne.s32.totalorder %s4235_s5, %s3414_s10  ;;  %p3421_p10 = scmp.lt.u32.totalorder %s3414_s10, %s4235_s5 }
  0x2d   : > { %p3417_p2 = pnand %p3415_p1, %p3743_p13 }
  0x2f   : > { %p3418_p6 = pneg %p3417_p2 }
  0x31   : > { %p3423_p3 = pnand %p3421_p10, %p3418_p6 }
  0x33   : > { %3426 = shalt.err (!%p3423_p3)
}
  0x34   : > { %s3427_s15 = scalar_lea.vmem %s3731_s18, 512  ;;  %p3435_p12 = scmp.lt.s32.totalorder %s3731_s18, %s3731_s18 }
  0x35   : > { %p3428_p5 = scmp.ne.s32.totalorder %s3731_s18, %s3427_s15  ;;  %p3436_p0 = scmp.lt.s32.totalorder %s3427_s15, %s3427_s15 }
  0x37   : > { %p3430_p7 = pnand %p3428_p5, %p3743_p13  ;;  %p3437_p1 = por %p3436_p0, %p3435_p12 }
  0x39   : > { %p3431_p9 = pneg %p3430_p7 }
  0x3b   : > { %p3438_p2 = pnand %p3437_p1, %p3431_p9 }
  0x3d   : > { %3441 = shalt.err (!%p3438_p2)
}
  0x3e   : > { %3119 = dma.hbm_to_vmem [thread:$0]  (!%p3727_p11), %s4235_s5, 512, %s3731_s18, [#allocation9], %s3607_s19, %s3607_s19, %s3608_s21  }
  0x3f   : > { %s3442_s24 = scalar_lea.hbm %s4233_s3, 512 }
  0x40   : > { %p3443_p6 = scmp.ne.s32.totalorder %s4233_s3, %s3442_s24  ;;  %p3449_p5 = scmp.lt.u32.totalorder %s3442_s24, %s4233_s3 }
  0x42   : > { %p3445_p10 = pnand %p3443_p6, %p3743_p13 }
  0x44   : > { %p3446_p3 = pneg %p3445_p10 }
  0x46   : > { %p3451_p7 = pnand %p3449_p5, %p3446_p3 }
  0x48   : > { %3454 = shalt.err (!%p3451_p7)
}
  0x49   : > { %s3455_s15 = scalar_lea.vmem %s259_s20, 512  ;;  %p3463_p1 = scmp.lt.s32.totalorder %s259_s20, %s259_s20 }
  0x4a   : > { %p3456_p9 = scmp.ne.s32.totalorder %s259_s20, %s3455_s15  ;;  %p3464_p2 = scmp.lt.s32.totalorder %s3455_s15, %s3455_s15 }
  0x4c   : > { %p3458_p12 = pnand %p3456_p9, %p3743_p13  ;;  %p3465_p4 = por %p3464_p2, %p3463_p1 }
  0x4e   : > { %p3459_p0 = pneg %p3458_p12 }
  0x50   : > { %p3466_p8 = pnand %p3465_p4, %p3459_p0 }
  0x52   : > { %3469 = shalt.err (!%p3466_p8)
}
  0x53   : > { %3116 = dma.hbm_to_vmem [thread:$0]  (!%p3727_p11), %s4233_s3, 512, %s259_s20, [#allocation6], %s3607_s19, %s3607_s19, %s3608_s21  }
  0x54   : > { %s3609_s12 = smov [#allocation10]   ;;  %s3470_s25 = scalar_lea.hbm %s4237_s7, 512 }
  0x55   : > { %s290_s22 = sshll.u32 %s3609_s12, 4  ;;  %p3471_p4 = scmp.ne.s32.totalorder %s4237_s7, %s3470_s25  ;;  %s291_s22 = int_to_ptr.vmem [resolvable:$true] %s290_s22 }
  0x56   : > { %p3477_p10 = scmp.lt.u32.totalorder %s3470_s25, %s4237_s7 }
  0x57   : > { %p3473_p8 = pnand %p3471_p4, %p3743_p13 }
  0x59   : > { %p3474_p6 = pneg %p3473_p8 }
  0x5b   : > { %p3479_p3 = pnand %p3477_p10, %p3474_p6 }
  0x5d   : > { %3482 = shalt.err (!%p3479_p3)
}
  0x5e   : > { %s3483_s20 = scalar_lea.vmem %s291_s22, 512  ;;  %p3491_p12 = scmp.lt.s32.totalorder %s291_s22, %s291_s22 }
  0x5f   : > { %p3484_p5 = scmp.ne.s32.totalorder %s291_s22, %s3483_s20  ;;  %p3492_p0 = scmp.lt.s32.totalorder %s3483_s20, %s3483_s20 }
  0x61   : > { %p3486_p7 = pnand %p3484_p5, %p3743_p13  ;;  %p3493_p1 = por %p3492_p0, %p3491_p12 }
  0x63   : > { %p3487_p9 = pneg %p3486_p7 }
  0x65   : > { %p3494_p2 = pnand %p3493_p1, %p3487_p9 }
  0x67   : > { %3497 = shalt.err (!%p3494_p2)
}
  0x68   : > { %3122 = dma.hbm_to_vmem [thread:$0]  (!%p3727_p11), %s4237_s7, 512, %s291_s22, [#allocation9], %s3607_s19, %s3607_s19, %s3608_s21  }
  0x69   : > { %s3837_s26 = sadd.s32 1, %s3602_s30   ;;  %s33_s16 = sadd.s32 1, %s3598_s29 }
  0x6a   : > { %s30_s12 = ssub.s32 %s3602_s30, %s3837_s26  ;;  %p40_p13 = scmp.ne.s32.totalorder %s3598_s29, %s3594_s28 }
  0x6b   : > { %p31_p4 = scmp.eq.s32.totalorder %s30_s12, 0  ;;  %p41_p8 = scmp.eq.s32.totalorder %s3602_s30, 0 }
  0x6c   : > { %p4254_p6 = scmp.eq.s32.totalorder %s3697_s9, 1  ;;  %p3135_p3 = scmp.lt.s32.totalorder %s3602_s30, 2 }
  0x6d   : > { %s3853_s24 = scalar_select %p31_p4, %s3598_s29, %s33_s16  }
  0x6e   : > { %p3847_p10 = por %p4254_p6, %p40_p13  ;;  %p42_p5 = por %p41_p8, %p40_p13 }
  0x6f   : > { %s304_s25 = sand.u32 1, %s3598_s29   ;;  %s2755_s19 = sshll.u32 %s3602_s30, 8 }
  0x70   : > { %s2664_s10 = sshll.u32 %s304_s25, 4  ;;  %s3860_s14 = scalar_lea.hbm %s4230_s0, %s2755_s19 }
  0x71   : > { %s308_s17 = scalar_lea.vmem [#allocation2], %s2664_s10  ;;  %p3864_p11 = pnand %p3135_p3, %p42_p5 }
  0x72   : > { %s315_s15 = sshll.u32 %s308_s17, 4  ;;  %s3868_s18 = scalar_lea.sflag [#allocation3], %s304_s25  ;;  %s3862_s15 = int_to_ptr.vmem [resolvable:$true] %s315_s15 }
  0x73   : > { %s3498_s27 = scalar_lea.hbm %s3860_s14, 256  ;;  %p3500_p9 = pneg %p3864_p11 }
  0x74   : > { %p3499_p7 = scmp.ne.s32.totalorder %s3860_s14, %s3498_s27  ;;  %s3503_s10 = scalar_lea.hbm %s4230_s0, 512 }
  0x75   : > { %p3504_p1 = scmp.lt.u32.totalorder %s3860_s14, %s4230_s0  ;;  %p3505_p2 = scmp.lt.u32.totalorder %s3503_s10, %s3498_s27 }
  0x76   : > { %p3501_p12 = pnand %p3500_p9, %p3499_p7  ;;  %p3507_p4 = scmp.lt.u32.totalorder %s3498_s27, %s3860_s14 }
  0x77   : > { %p3506_p13 = por %p3505_p2, %p3504_p1 }
  0x78   : > { %p3502_p0 = pneg %p3501_p12 }
  0x79   : > { %p3508_p8 = por %p3507_p4, %p3506_p13 }
  0x7b   : > { %p3509_p6 = pnand %p3508_p8, %p3502_p0 }
  0x7d   : > { %3512 = shalt.err (!%p3509_p6)
}
  0x7e   : > { %s3513_s25 = scalar_lea.vmem %s3862_s15, 256  ;;  %s3610_s22 = smov [#allocation2]  }
  0x7f   : > { %p3514_p3 = scmp.ne.s32.totalorder %s3862_s15, %s3513_s25  ;;  %s3518_s17 = sshll.u32 %s3610_s22, 4  ;;  %s3519_s17 = int_to_ptr.vmem [resolvable:$false] %s3518_s17 }
  0x80   : > { %s3520_s16 = scalar_lea.vmem %s3519_s17, 512  ;;  %p3521_p12 = scmp.lt.s32.totalorder %s3862_s15, %s3519_s17 }
  0x81   : > { %p3516_p5 = pnand %p3514_p3, %p3500_p9  ;;  %p3522_p1 = scmp.lt.s32.totalorder %s3520_s16, %s3513_s25 }
  0x83   : > { %p3517_p7 = pneg %p3516_p5  ;;  %p3523_p2 = por %p3522_p1, %p3521_p12 }
  0x85   : > { %p3524_p13 = pnand %p3523_p2, %p3517_p7 }
  0x87   : > { %3527 = shalt.err (!%p3524_p13)
}
  0x88   : > { %s3611_s27 = smov 128   ;;  %s3612_s12 = smov 8  }
  0x89   : > { %3126 = dma.hbm_to_vmem [thread:$0]  (!%p3864_p11), %s3860_s14, 256, %s3862_s15, %s3868_s18, %s3611_s27, %s3611_s27, %s3612_s12  }
  0x8a   : > { %p4257_p9 = scmp.ne.s32.totalorder %s4251_s13, 0 }
  0x8b   : > { %s3899_s10 = sand.u32 (!%p4257_p9), 1, %s3594_s28   ;;  %p4258_p0 = scmp.ne.s32.totalorder (!%p4257_p9), %s4248_s11, 0 }
  0x8c   : > { %327 = sbr.rel (%p4257_p9) target bundleno = 3771 (0xebb), region = 52  ;;  %s4244_s19 = sshll.u32 (!%p4257_p9), %s3899_s10, 4 }
  0x8d   : > { %s330_s21 = scalar_lea.sflag (!%p4257_p9), [#allocation3], %s3899_s10  ;;  %s333_s25 = scalar_lea.vmem (!%p4257_p9), [#allocation2], %s4244_s19 }
  0x93   : > { %3573 = dma.done.wait (%p4258_p0), %s330_s21, 256  }
  0x94   : > { %3575 = vsyncadd (%p4258_p0), %s330_s21, 4294967040  ;;  %p4259_p11 = scmp.eq.s32.totalorder %s3697_s9, 0 }
  0x96   : > { %3577 = dma.done.wait (%p4259_p11), [#allocation6], 768   ;;  %p4260_p4 = pmov %p4259_p11 }
  0x98   : > { %3579 = vsyncadd (%p4260_p4), [#allocation6], 4294966528  ;;  %p4261_p8 = pmov %p4260_p4 }
  0x99   : > { %p4262_p6 = pmov %p4260_p4 }
  0x9a   : > { %3581 = dma.done.wait (%p4261_p8), [#allocation9], 1024  }
  0x9b   : > { %3583 = vsyncadd (%p4262_p6), [#allocation9], 4294966272  ;;  %v3613_v0 = vmov 0.0   ;;  %vm3614_vm0 = vmmov 0   ;;  %v3308_v1 = vld [vmem:[#allocation5] sm:$0xff]   ;;  %v3309_v2 = vld [vmem:[#allocation5 + $0x8] sm:$0xff]  }
  0x9c   : > { %2842 = vmatprep.subr.bf16.mxu0 %v3613_v0  ;;  %2846 = vmatprep.mubr.msk.bf16.mxu0 %vm3614_vm0, %v3613_v0  ;;  %v385_v3 = vld [vmem:[%s333_s25] sm:$0xff]  ;;  %v386_v4 = vld [vmem:[%s333_s25 + $0x8] sm:$0xff]  ;;  %vm404_vm1 = vcmask 261120   ;;  %vm534_vm2 = vcmask 64512   ;;  %s3615_s20 = smov 80   ;;  %s3616_s18 = smov 96  }
  0x9d   : > { %2850 = vmatprep.subr.bf16.mxu1 %v3613_v0  ;;  %2854 = vmatprep.mubr.msk.bf16.mxu1 %vm3614_vm0, %v3613_v0  ;;  %v387_v5 = vpack.c.bf16 %v386_v4, %v385_v3  ;;  %v3310_v6 = vld [vmem:[#allocation7] sm:$0xff]   ;;  %v3311_v7 = vld [vmem:[#allocation7 + $0x8] sm:$0xff]   ;;  %v2677_v11 = vld [vmem:[%s4232_s2] ss:$0 sm:$0xff]  ;;  %s3617_s22 = smov 72   ;;  %s3618_s17 = smov 88  }
  0x9e   : > { %2843 = vmatpush3.bf16.msra.mxu0 %v3308_v1  ;;  %2851 = vmatpush3.bf16.msra.mxu1 %v3310_v6  ;;  %v2678_v18 = vld [vmem:[%s4234_s4] ss:$0 sm:$0xff]  ;;  %s3619_s16 = smov 120   ;;  %s3620_s27 = smov 112   ;;  %vm3958_vm3 = vmpackc.low %vm534_vm2, %vm534_vm2  ;;  %vm891_vm4 = vcmask 130048   ;;  %vm1356_vm5 = vcmask 195584  }
  0x9f   : > { %2844 = vmatprep.subr.bf16.mxu0 %v3613_v0  ;;  %2852 = vmatprep.subr.bf16.mxu1 %v3613_v0  ;;  %s3621_s12 = smov 104   ;;  %s3622_s21 = smov 64  }
  0xa0   : > { %s3623_s25 = smov 48   ;;  %s3624_s11 = smov 56  }
  0xa1   : > { %s3625_s13 = smov 40   ;;  %s3626_s14 = smov 8  }
  0xa2   : > { %2845 = vmatpush3.bf16.msra.mxu0 %v3309_v2  ;;  %2853 = vmatpush3.bf16.msra.mxu1 %v3311_v7  ;;  %s4246_s15 = smov 16   ;;  %s4245_s19 = smov 24  }
  0xa5   : > { %2847 = vmatmul.mubr.msk.bf16.vlgmr.msra.gmra.mrb[0].mxu0 %vm404_vm1, %v387_v5 }
 0x178   : > { %v442_v8 = vpop.f32.mrb[0].mxu0 }
 0x179   : > { %v449_v9 = vadd.f32 %v442_v8, %v385_v3  ;;  %v2848_v10 = vpop.f32.mrb[1].mxu0 }
 0x17a   : > { %v445_v12 = vpop.f32.mrb[2].mxu0 }
 0x17b   : > { %v450_v13 = vadd.f32 %v445_v12, %v386_v4  ;;  %v2849_v14 = vpop.f32.mrb[3].mxu0  ;;  %v3929_v15 = vadd.f32 %v2677_v11, %v449_v9 }
 0x17d   : > { %v3931_v16 = vadd.f32 %v2677_v11, %v450_v13 }
 0x17f   : > { %v460_v17 = vpack.c.bf16 %v3931_v16, %v3929_v15 }
 0x181   : > { %2855 = vmatmul.mubr.msk.bf16.vlgmr.msra.gmra.mrb[0].mxu1 %vm404_vm1, %v460_v17 }
 0x254   : > { %v521_v19 = vpop.f32.mrb[0].mxu1 }
 0x255   : > { %v522_v20 = vadd.f32 %v2678_v18, %v521_v19  ;;  %v2856_v21 = vpop.f32.mrb[1].mxu1 }
 0x256   : > { %v524_v22 = vpop.f32.mrb[2].mxu1 }
 0x257   : > { %v525_v23 = vadd.f32 %v2678_v18, %v524_v22  ;;  %v2857_v24 = vpop.f32.mrb[3].mxu1  ;;  %2862 = vmatprep.mubr.msk.f32.mxu0 %vm534_vm2, %v522_v20 }
 0x259   : > { %v3940_v25 = vpack.i.bf16 %v525_v23, %v522_v20 }
 0x25b   : > { %3209 = vrot.lane.b32.xlu1 %v3940_v25, %s3615_s20  ;;  %3199 = vrot.lane.b32.xlu0 %v3940_v25, %s3616_s18 }
 0x25f   : > { %3214 = vrot.lane.b32.xlu1 %v3940_v25, %s3617_s22  ;;  %3204 = vrot.lane.b32.xlu0 %v3940_v25, %s3618_s17 }
 0x263   : > { %620 = vrot.lane.b32.xlu1 %v525_v23, %s3619_s16  ;;  %618 = vrot.lane.b32.xlu0 %v522_v20, %s3619_s16 }
 0x267   : > { %711 = vrot.lane.b32.xlu1 %v525_v23, %s3620_s27  ;;  %709 = vrot.lane.b32.xlu0 %v522_v20, %s3620_s27 }
 0x26b   : > { %802 = vrot.lane.b32.xlu1 %v525_v23, %s3621_s12  ;;  %800 = vrot.lane.b32.xlu0 %v522_v20, %s3621_s12 }
 0x2cd   : > { %v3210_v26 = vpop.permute.xlu1 %3209  ;;  %v3200_v27 = vpop.permute.xlu0 %3199 }
 0x2ce   : > { %v3212_v28 = vunpack.i.h.bf16 %v3210_v26  ;;  %v3211_v29 = vunpack.i.l.bf16 %v3210_v26  ;;  %v3202_v30 = vunpack.i.h.bf16 %v3200_v27  ;;  %v3201_v31 = vunpack.i.l.bf16 %v3200_v27 }
 0x2d0   : > { %v3010_v33 = vpack.c.bf16 %v3202_v30, %v3201_v31  ;;  %v3022_v34 = vpack.c.bf16 %v3212_v28, %v3211_v29 }
 0x2d1   : > { %v3215_v35 = vpop.permute.xlu1 %3214  ;;  %v3205_v36 = vpop.permute.xlu0 %3204 }
 0x2d2   : > { %v3217_v37 = vunpack.i.h.bf16 %v3215_v35  ;;  %v3216_v38 = vunpack.i.l.bf16 %v3215_v35  ;;  %v3207_v39 = vunpack.i.h.bf16 %v3205_v36  ;;  %v3206_v40 = vunpack.i.l.bf16 %v3205_v36  ;;  %3012 = vmatprep.subr.msk.bf16.mxu0 %vm3958_vm3, %v3010_v33 }
 0x2d3   : > { %3015 = vmatpush3.bf16.xpose.msk.msra.mxu0 %vm3958_vm3, %v3010_v33 }
 0x2d4   : > { %v3016_v41 = vpack.c.bf16 %v3207_v39, %v3206_v40  ;;  %3024 = vmatprep.subr.msk.bf16.mxu0 %vm3958_vm3, %v3022_v34  ;;  %v3028_v43 = vpack.c.bf16 %v3217_v37, %v3216_v38 }
 0x2d5   : > { %v619_v42 = vpop.permute.xlu0 %618  ;;  %v621_v44 = vpop.permute.xlu1 %620 }
 0x2d6   : > { %3018 = vmatprep.subr.msk.bf16.mxu1 %vm3958_vm3, %v3016_v41  ;;  %2869 = vmatprep.mubr.msk.f32.mxu1 %vm534_vm2, %v619_v42 }
 0x2d7   : > { %3021 = vmatpush3.bf16.xpose.msk.msra.mxu1 %vm3958_vm3, %v3016_v41 }
 0x2d8   : > { %3030 = vmatprep.subr.msk.bf16.mxu1 %vm3958_vm3, %v3028_v43 }
 0x2d9   : > { %v710_v45 = vpop.permute.xlu0 %709  ;;  %v712_v47 = vpop.permute.xlu1 %711 }
 0x2da   : > { %2863 = vmatmul.mubr.msk.f32.vlgmr.msra.gmra.mrb[4].mxu0 %vm534_vm2, %v525_v23 }
 0x2db   : > { %3027 = vmatpush3.bf16.xpose.msk.msra.mxu0 %vm3958_vm3, %v3022_v34  ;;  %2876 = vmatprep.mubr.msk.f32.mxu0 %vm534_vm2, %v710_v45 }
 0x2dd   : > { %v801_v46 = vpop.permute.xlu0 %800  ;;  %v803_v48 = vpop.permute.xlu1 %802 }
 0x2de   : > { %2870 = vmatmul.mubr.msk.f32.vlgmr.msra.gmra.mrb[4].mxu1 %vm534_vm2, %v621_v44 }
 0x2df   : > { %3033 = vmatpush3.bf16.xpose.msk.msra.mxu1 %vm3958_vm3, %v3028_v43  ;;  %2883 = vmatprep.mubr.msk.f32.mxu1 %vm534_vm2, %v801_v46 }
 0x2e2   : > { %2877 = vmatmul.mubr.msk.f32.vlgmr.msra.gmra.mrb[6].mxu0 %vm534_vm2, %v712_v47 }
 0x2e6   : > { %2884 = vmatmul.mubr.msk.f32.vlgmr.msra.gmra.mrb[6].mxu1 %vm534_vm2, %v803_v48 }
 0x3ad   : > { %v2864_v49 = vpop.f32.mrb[4].mxu0 }
 0x3ae   : > { %v609_v50 = vpop.f32.mrb[5].mxu0  ;;  %v895_v51 = vsel %vm891_vm4, %v2864_v49, -inf }
 0x3af   : > { %896 = vmax.xlane.f32.xlu1 %v895_v51  ;;  %v892_v57 = vsel %vm891_vm4, %v609_v50, -inf }
 0x3b1   : > { %v2871_v52 = vpop.f32.mrb[4].mxu1 }
 0x3b2   : > { %v700_v53 = vpop.f32.mrb[5].mxu1  ;;  %v901_v54 = vsel %vm891_vm4, %v2871_v52, -inf }
 0x3b3   : > { %902 = vmax.xlane.f32.xlu0 %v901_v54  ;;  %v898_v61 = vsel %vm891_vm4, %v700_v53, -inf }
 0x3b5   : > { %v2878_v55 = vpop.f32.mrb[6].mxu0 }
 0x3b6   : > { %v3987_v56 = vpop.f32.mrb[7].mxu0  ;;  %v907_v63 = vsel %vm891_vm4, %v2878_v55, -inf }
 0x3b7   : > { %893 = vmax.xlane.f32.xlu0 %v892_v57  ;;  %v904_v58 = vsel %vm891_vm4, %v3987_v56, -inf }
 0x3b8   : > { %905 = vmax.xlane.f32.xlu1 %v904_v58 }
 0x3b9   : > { %v2885_v59 = vpop.f32.mrb[6].mxu1 }
 0x3ba   : > { %v3992_v60 = vpop.f32.mrb[7].mxu1  ;;  %v913_v1 = vsel %vm891_vm4, %v2885_v59, -inf }
 0x3bb   : > { %899 = vmax.xlane.f32.xlu0 %v898_v61  ;;  %v910_v62 = vsel %vm891_vm4, %v3992_v60, -inf }
 0x3bc   : > { %911 = vmax.xlane.f32.xlu1 %v910_v62 }
 0x3bf   : > { %908 = vmax.xlane.f32.xlu0 %v907_v63 }
 0x3c3   : > { %914 = vmax.xlane.f32.xlu0 %v913_v1 }
 0x3cd   : > { %3219 = vrot.lane.b32.xlu1 %v3940_v25, %s3622_s21 }
 0x43c   : > { %v897_v2 = vpop.xlane.xlu1 %896 }
 0x43d   : > { %v917_v3 = vsub.f32 %v2864_v49, %v897_v2 }
 0x43f   : > { %v926_v4 = vmul.f32 1.442695, %v917_v3 }
 0x440   : > { %v903_v5 = vpop.xlane.xlu0 %902 }
 0x441   : > { %3322 = vpow2.f32 %v926_v4  ;;  %v919_v6 = vsub.f32 %v2871_v52, %v903_v5 }
 0x443   : > { %v930_v7 = vmul.f32 1.442695, %v919_v6 }
 0x444   : > { %v894_v8 = vpop.xlane.xlu0 %893 }
 0x445   : > { %3324 = vpow2.f32 %v930_v7  ;;  %v916_v9 = vsub.f32 %v609_v50, %v894_v8  ;;  %v906_v10 = vpop.xlane.xlu1 %905 }
 0x446   : > { %v920_v42 = vsub.f32 %v3987_v56, %v906_v10 }
 0x447   : > { %v924_v11 = vmul.f32 1.442695, %v916_v9 }
 0x448   : > { %v900_v12 = vpop.xlane.xlu0 %899  ;;  %v932_v43 = vmul.f32 1.442695, %v920_v42 }
 0x449   : > { %3326 = vpow2.f32 %v924_v11  ;;  %v918_v13 = vsub.f32 %v700_v53, %v900_v12  ;;  %v912_v14 = vpop.xlane.xlu1 %911 }
 0x44a   : > { %v922_v44 = vsub.f32 %v3992_v60, %v912_v14 }
 0x44b   : > { %v4001_v17 = vpop.eup %3322  ;;  %v928_v18 = vmul.f32 1.442695, %v918_v13 }
 0x44c   : > { %v909_v19 = vpop.xlane.xlu0 %908  ;;  %v943_v20 = vsel %vm891_vm4, %v4001_v17, 0.0  ;;  %v936_v45 = vmul.f32 1.442695, %v922_v44 }
 0x44d   : > { %3328 = vpow2.f32 %v928_v18  ;;  %v921_v21 = vsub.f32 %v2878_v55, %v909_v19  ;;  %944 = vadd.xlane.f32.xlu0 %v943_v20  ;;  %v3220_v22 = vpop.permute.xlu1 %3219 }
 0x44e   : > { %v3222_v23 = vunpack.i.h.bf16 %v3220_v22  ;;  %v3221_v24 = vunpack.i.l.bf16 %v3220_v22 }
 0x44f   : > { %v4005_v26 = vpop.eup %3324  ;;  %v934_v27 = vmul.f32 1.442695, %v921_v21 }
 0x450   : > { %v3034_v28 = vpack.c.bf16 %v3222_v23, %v3221_v24  ;;  %v915_v29 = vpop.xlane.xlu0 %914  ;;  %v949_v30 = vsel %vm891_vm4, %v4005_v26, 0.0 }
 0x451   : > { %3330 = vpow2.f32 %v934_v27  ;;  %v923_v31 = vsub.f32 %v2885_v59, %v915_v29  ;;  %950 = vadd.xlane.f32.xlu0 %v949_v30  ;;  %v3312_v30 = vld [vmem:[#allocation8] sm:$0xff]  }
 0x452   : > { %3035 = vmatprep.subr.bf16.mxu0 %v3034_v28 }
 0x453   : > { %v3327_v33 = vpop.eup %3326  ;;  %v938_v34 = vmul.f32 1.442695, %v923_v31  ;;  %3037 = vmatpush3.bf16.msra.mxu0 %v3034_v28  ;;  %v3313_v31 = vld [vmem:[#allocation8 + $0x8] sm:$0xff]  }
 0x454   : > { %v940_v35 = vsel %vm891_vm4, %v3327_v33, 0.0 }
 0x455   : > { %3332 = vpow2.f32 %v938_v34  ;;  %941 = vadd.xlane.f32.xlu1 %v940_v35 }
 0x456   : > { %3334 = vpow2.f32 %v932_v43 }
 0x457   : > { %v3329_v36 = vpop.eup %3328  ;;  %3336 = vpow2.f32 %v936_v45 }
 0x458   : > { %v946_v37 = vsel %vm891_vm4, %v3329_v36, 0.0 }
 0x459   : > { %947 = vadd.xlane.f32.xlu1 %v946_v37 }
 0x45b   : > { %v4011_v38 = vpop.eup %3330 }
 0x45c   : > { %v955_v39 = vsel %vm891_vm4, %v4011_v38, 0.0 }
 0x45d   : > { %956 = vadd.xlane.f32.xlu0 %v955_v39 }
 0x45f   : > { %v4015_v40 = vpop.eup %3332 }
 0x460   : > { %v961_v41 = vsel %vm891_vm4, %v4015_v40, 0.0  ;;  %v3335_v46 = vpop.eup %3334 }
 0x461   : > { %962 = vadd.xlane.f32.xlu0 %v961_v41  ;;  %v952_v47 = vsel %vm891_vm4, %v3335_v46, 0.0  ;;  %v3337_v48 = vpop.eup %3336 }
 0x462   : > { %v958_v49 = vsel %vm891_vm4, %v3337_v48, 0.0 }
 0x46a   : > { %3229 = vrot.lane.b32.xlu1 %v3940_v25, %s3623_s25 }
 0x477   : > { %3224 = vrot.lane.b32.xlu0 %v3940_v25, %s3624_s11 }
 0x48e   : > { %953 = vadd.xlane.f32.xlu1 %v952_v47 }
 0x492   : > { %959 = vadd.xlane.f32.xlu1 %v958_v49 }
 0x4a3   : > { %3234 = vrot.lane.b32.xlu1 %v3940_v25, %s3625_s13 }
 0x4da   : > { %v945_v50 = vpop.xlane.xlu0 %944 }
 0x4db   : > { %3338 = vrcp.f32 %v945_v50 }
 0x4de   : > { %v951_v52 = vpop.xlane.xlu0 %950 }
 0x4e2   : > { %v942_v51 = vpop.xlane.xlu1 %941 }
 0x4e3   : > { %3340 = vrcp.f32 %v942_v51 }
 0x4e5   : > { %v3339_v58 = vpop.eup %3338 }
 0x4e6   : > { %v948_v53 = vpop.xlane.xlu1 %947  ;;  %v973_v63 = vmul.f32 %v3339_v58, %v4001_v17 }
 0x4e7   : > { %3342 = vrcp.f32 %v948_v53 }
 0x4e8   : > { %3344 = vrcp.f32 %v951_v52 }
 0x4ea   : > { %v957_v54 = vpop.xlane.xlu0 %956  ;;  %v3230_v55 = vpop.permute.xlu1 %3229 }
 0x4eb   : > { %v3232_v56 = vunpack.i.h.bf16 %v3230_v55  ;;  %v3231_v57 = vunpack.i.l.bf16 %v3230_v55  ;;  %3346 = vrcp.f32 %v957_v54  ;;  %v3314_v55 = vld [vmem:[#allocation10] sm:$0xff]  }
 0x4ed   : > { %v3341_v59 = vpop.eup %3340  ;;  %v3042_v60 = vpack.c.bf16 %v3232_v56, %v3231_v57  ;;  %v3315_v56 = vld [vmem:[#allocation10 + $0x8] sm:$0xff]  }
 0x4ee   : > { %v963_v61 = vpop.xlane.xlu0 %962  ;;  %v972_v62 = vmul.f32 %v3341_v59, %v3327_v33 }
 0x4ef   : > { %3043 = vmatprep.subr.bf16.mxu0 %v3042_v60 }
 0x4f0   : > { %2890 = vmatprep.mubr.msk.f32.mxu0 %vm891_vm4, %v972_v62 }
 0x4f1   : > { %v3343_v25 = vpop.eup %3342  ;;  %2891 = vmatmul.mubr.msk.f32.vlgmr.msra.gmra.mrb[8].mxu0 %vm891_vm4, %v973_v63 }
 0x4f2   : > { %3045 = vmatpush3.bf16.msra.mxu0 %v3042_v60  ;;  %v3225_v1 = vpop.permute.xlu0 %3224  ;;  %v974_v2 = vmul.f32 %v3343_v25, %v3329_v36  ;;  %v3345_v6 = vpop.eup %3344  ;;  %v2709_v60 = vld [vmem:[%s4236_s6] ss:$0 sm:$0xff] }
 0x4f3   : > { %v3227_v3 = vunpack.i.h.bf16 %v3225_v1  ;;  %v3226_v4 = vunpack.i.l.bf16 %v3225_v1  ;;  %2914 = vmatprep.subr.bf16.mxu0 %v3613_v0  ;;  %v975_v7 = vmul.f32 %v3345_v6, %v4005_v26 }
 0x4f4   : > { %2897 = vmatprep.mubr.msk.f32.mxu1 %vm891_vm4, %v974_v2 }
 0x4f5   : > { %v3038_v5 = vpack.c.bf16 %v3227_v3, %v3226_v4  ;;  %v3347_v13 = vpop.eup %3346  ;;  %v3316_v3 = vld [vmem:[#allocation7 + $0x10] sm:$0xff]   ;;  %v3317_v4 = vld [vmem:[#allocation7 + $0x18] sm:$0xff]  }
 0x4f6   : > { %v977_v19 = vmul.f32 %v3347_v13, %v4011_v38 }
 0x4f7   : > { %3039 = vmatprep.subr.bf16.mxu1 %v3038_v5 }
 0x4f8   : > { %3041 = vmatpush3.bf16.msra.mxu1 %v3038_v5 }
 0x4fb   : > { %2898 = vmatmul.mubr.msk.f32.vlgmr.msra.gmra.mrb[8].mxu1 %vm891_vm4, %v975_v7 }
 0x51b   : > { %v954_v8 = vpop.xlane.xlu1 %953 }
 0x51c   : > { %3348 = vrcp.f32 %v954_v8 }
 0x51d   : > { %3350 = vrcp.f32 %v963_v61 }
 0x51f   : > { %v960_v9 = vpop.xlane.xlu1 %959 }
 0x520   : > { %3352 = vrcp.f32 %v960_v9 }
 0x523   : > { %v3235_v10 = vpop.permute.xlu1 %3234 }
 0x524   : > { %v3237_v11 = vunpack.i.h.bf16 %v3235_v10  ;;  %v3236_v12 = vunpack.i.l.bf16 %v3235_v10  ;;  %v2714_v10 = vld [vmem:[%s4234_s4 + $0x1] ss:$0 sm:$0xff] }
 0x526   : > { %v3349_v14 = vpop.eup %3348  ;;  %v3046_v17 = vpack.c.bf16 %v3237_v11, %v3236_v12 }
 0x527   : > { %v976_v18 = vmul.f32 %v3349_v14, %v3335_v46  ;;  %v3351_v20 = vpop.eup %3350 }
 0x528   : > { %3047 = vmatprep.subr.bf16.mxu1 %v3046_v17  ;;  %v979_v23 = vmul.f32 %v3351_v20, %v4015_v40 }
 0x529   : > { %2904 = vmatprep.mubr.msk.f32.mxu0 %vm891_vm4, %v976_v18  ;;  %3049 = vmatpush3.bf16.msra.mxu1 %v3046_v17 }
 0x52a   : > { %v3353_v21 = vpop.eup %3352  ;;  %2905 = vmatmul.mubr.msk.f32.vlgmr.msra.gmra.mrb[10].mxu0 %vm891_vm4, %v977_v19  ;;  %2922 = vmatprep.subr.bf16.mxu1 %v3613_v0 }
 0x52b   : > { %v978_v22 = vmul.f32 %v3353_v21, %v3337_v48  ;;  %2918 = vmatprep.mubr.msk.bf16.mxu0 %vm3614_vm0, %v3613_v0  ;;  %2915 = vmatpush3.bf16.msra.mxu0 %v3312_v30 }
 0x52c   : > { %2916 = vmatprep.subr.bf16.mxu0 %v3613_v0 }
 0x52d   : > { %2911 = vmatprep.mubr.msk.f32.mxu1 %vm891_vm4, %v978_v22 }
 0x52e   : > { %2912 = vmatmul.mubr.msk.f32.vlgmr.msra.gmra.mrb[10].mxu1 %vm891_vm4, %v979_v23 }
 0x52f   : > { %2926 = vmatprep.mubr.msk.bf16.mxu1 %vm3614_vm0, %v3613_v0  ;;  %2917 = vmatpush3.bf16.msra.mxu0 %v3313_v31 }
 0x530   : > { %2930 = vmatprep.subr.bf16.mxu0 %v3613_v0  ;;  %2923 = vmatpush3.bf16.msra.mxu1 %v3314_v55 }
 0x531   : > { %2924 = vmatprep.subr.bf16.mxu1 %v3613_v0 }
 0x534   : > { %2925 = vmatpush3.bf16.msra.mxu1 %v3315_v56 }
 0x5c4   : > { %v2892_v24 = vpop.f32.mrb[8].mxu0 }
 0x5c5   : > { %v1058_v26 = vpop.f32.mrb[9].mxu0 }
 0x5ce   : > { %v2899_v27 = vpop.f32.mrb[8].mxu1 }
 0x5cf   : > { %v1145_v28 = vpop.f32.mrb[9].mxu1 }
 0x5d0   : > { %v3238_v29 = vpack.i.bf16 %v2899_v27, %v1145_v28 }
 0x5d2   : > { %3239 = vrot.lane.b32.xlu0 %v3238_v29, %s3626_s14 }
 0x5fd   : > { %v2906_v33 = vpop.f32.mrb[10].mxu0 }
 0x5fe   : > { %v1232_v34 = vpop.f32.mrb[11].mxu0 }
 0x5ff   : > { %v3243_v35 = vpack.i.bf16 %v2906_v33, %v1232_v34 }
 0x601   : > { %v2913_v36 = vpop.f32.mrb[10].mxu1  ;;  %3244 = vrot.lane.b32.xlu1 %v3243_v35, %s4246_s15  ;;  %s3629_s15 = smov [#allocation11]  }
 0x602   : > { %v1319_v37 = vpop.f32.mrb[11].mxu1 }
 0x603   : > { %v3248_v38 = vpack.i.bf16 %v2913_v36, %v1319_v37 }
 0x605   : > { %3249 = vrot.lane.b32.xlu0 %v3248_v38, %s4245_s19 }
 0x644   : > { %v3240_v39 = vpop.permute.xlu0 %3239 }
 0x645   : > { %v3242_v41 = vunpack.i.h.bf16 %v3240_v39  ;;  %v3241_v42 = vunpack.i.l.bf16 %v3240_v39 }
 0x647   : > { %v1352_v46 = vsel %vm534_vm2, %v1058_v26, %v3241_v42  ;;  %v1353_v47 = vsel %vm534_vm2, %v2892_v24, %v3242_v41 }
 0x673   : > { %v3245_v40 = vpop.permute.xlu1 %3244 }
 0x674   : > { %v3247_v43 = vunpack.i.h.bf16 %v3245_v40  ;;  %v3246_v44 = vunpack.i.l.bf16 %v3245_v40 }
 0x676   : > { %v1355_v50 = vsel %vm891_vm4, %v1353_v47, %v3247_v43  ;;  %v1354_v51 = vsel %vm891_vm4, %v1352_v46, %v3246_v44 }
 0x677   : > { %v3250_v45 = vpop.permute.xlu0 %3249 }
 0x678   : > { %v3252_v48 = vunpack.i.h.bf16 %v3250_v45  ;;  %v3251_v49 = vunpack.i.l.bf16 %v3250_v45 }
 0x67a   : > { %v1357_v52 = vsel %vm1356_vm5, %v1354_v51, %v3251_v49  ;;  %v1358_v53 = vsel %vm1356_vm5, %v1355_v50, %v3252_v48 }
 0x67b   : > { %v1359_v54 = vpack.c.bf16 %v1358_v53, %v1357_v52 }
 0x67d   : > { %2919 = vmatmul.mubr.msk.bf16.vlgmr.msra.gmra.mrb[12].mxu0 %vm404_vm1, %v1359_v54 }
 0x67e   : > { %2934 = vmatprep.mubr.msk.bf16.mxu0 %vm3614_vm0, %v3613_v0  ;;  %2931 = vmatpush3.bf16.msra.mxu0 %v3316_v3 }
 0x67f   : > { %2932 = vmatprep.subr.bf16.mxu0 %v3613_v0 }
 0x682   : > { %2933 = vmatpush3.bf16.msra.mxu0 %v3317_v4 }
 0x750   : > { %v1413_v57 = vpop.f32.mrb[12].mxu0 }
 0x751   : > { %v1420_v58 = vadd.f32 %v1413_v57, %v3929_v15  ;;  %v2920_v59 = vpop.f32.mrb[13].mxu0 }
 0x752   : > { %v1416_v61 = vpop.f32.mrb[14].mxu0 }
 0x753   : > { %v1421_v62 = vadd.f32 %v1416_v61, %v3931_v16  ;;  %v2921_v63 = vpop.f32.mrb[15].mxu0  ;;  %v1429_v25 = vadd.f32 %v2709_v60, %v1420_v58 }
 0x755   : > { %v1430_v1 = vadd.f32 %v2709_v60, %v1421_v62 }
 0x757   : > { %v1431_v2 = vpack.c.bf16 %v1430_v1, %v1429_v25 }
 0x759   : > { %2927 = vmatmul.mubr.msk.bf16.vlgmr.msra.gmra.mrb[12].mxu1 %vm404_vm1, %v1431_v2 }
 0x82c   : > { %v1485_v15 = vpop.f32.mrb[12].mxu1 }
 0x82d   : > { %v2928_v5 = vpop.f32.mrb[13].mxu1  ;;  %v4069_v7 = vadd.f32 %v1485_v15, %v1429_v25 }
 0x82e   : > { %v1488_v6 = vpop.f32.mrb[14].mxu1 }
 0x82f   : > { %v4071_v8 = vadd.f32 %v1488_v6, %v1430_v1  ;;  %v2929_v16 = vpop.f32.mrb[15].mxu1 }
 0x831   : > { %v1494_v9 = vpack.c.bf16 %v4071_v8, %v4069_v7 }
 0x833   : > { %2935 = vmatmul.mubr.msk.bf16.vlgmr.msra.gmra.mrb[16].mxu0 %vm404_vm1, %v1494_v9 }
 0x906   : > { %v1557_v11 = vpop.f32.mrb[16].mxu0 }
 0x907   : > { %v1558_v12 = vadd.f32 %v2714_v10, %v1557_v11  ;;  %v2936_v13 = vpop.f32.mrb[17].mxu0 }
 0x908   : > { %v1560_v14 = vpop.f32.mrb[18].mxu0 }
 0x909   : > { %v1561_v17 = vadd.f32 %v2714_v10, %v1560_v14  ;;  %v2937_v18 = vpop.f32.mrb[19].mxu0  ;;  %2942 = vmatprep.mubr.msk.f32.mxu1 %vm534_vm2, %v1558_v12 }
 0x90b   : > { %v4080_v19 = vpack.i.bf16 %v1561_v17, %v1558_v12 }
 0x90d   : > { %3259 = vrot.lane.b32.xlu0 %v4080_v19, %s3618_s17  ;;  %3254 = vrot.lane.b32.xlu1 %v4080_v19, %s3616_s18  ;;  %s4266_s18 = smov 24  }
 0x911   : > { %3269 = vrot.lane.b32.xlu0 %v4080_v19, %s3617_s22  ;;  %3264 = vrot.lane.b32.xlu1 %v4080_v19, %s3615_s20  ;;  %s4265_s20 = smov 16  }
 0x915   : > { %1655 = vrot.lane.b32.xlu0 %v1561_v17, %s3619_s16  ;;  %1653 = vrot.lane.b32.xlu1 %v1558_v12, %s3619_s16  ;;  %s4267_s16 = sshll.u32 %s3899_s10, 4 }
 0x919   : > { %1746 = vrot.lane.b32.xlu0 %v1561_v17, %s3620_s27  ;;  %1744 = vrot.lane.b32.xlu1 %v1558_v12, %s3620_s27  ;;  %s381_s27 = scalar_lea.vmem [#allocation11], %s4267_s16 }
 0x91d   : > { %1837 = vrot.lane.b32.xlu0 %v1561_v17, %s3621_s12  ;;  %1835 = vrot.lane.b32.xlu1 %v1558_v12, %s3621_s12  ;;  %s2546_s12 = sshll.u32 %s381_s27, 4  ;;  %s4178_s12 = int_to_ptr.vmem [resolvable:$true] %s2546_s12 }
 0x91e   : > { %s3528_s19 = scalar_lea.vmem %s4178_s12, 256 }
 0x91f   : > { %p3529_p3 = scmp.ne.s32.totalorder %s4178_s12, %s3528_s19 }
 0x921   : > { %p3530_p5 = pnand %p3529_p3, %p3847_p10 }
 0x923   : > { %p3531_p7 = pneg %p3530_p5 }
 0x97f   : > { %v3260_v20 = vpop.permute.xlu0 %3259  ;;  %v3255_v21 = vpop.permute.xlu1 %3254 }
 0x980   : > { %v3262_v22 = vunpack.i.h.bf16 %v3260_v20  ;;  %v3261_v23 = vunpack.i.l.bf16 %v3260_v20  ;;  %v3257_v24 = vunpack.i.h.bf16 %v3255_v21  ;;  %v3256_v26 = vunpack.i.l.bf16 %v3255_v21 }
 0x982   : > { %v3056_v27 = vpack.c.bf16 %v3262_v22, %v3261_v23  ;;  %v3050_v28 = vpack.c.bf16 %v3257_v24, %v3256_v26 }
 0x983   : > { %v3270_v29 = vpop.permute.xlu0 %3269  ;;  %v3265_v30 = vpop.permute.xlu1 %3264 }
 0x984   : > { %v3272_v31 = vunpack.i.h.bf16 %v3270_v29  ;;  %v3271_v33 = vunpack.i.l.bf16 %v3270_v29  ;;  %v3267_v34 = vunpack.i.h.bf16 %v3265_v30  ;;  %v3266_v35 = vunpack.i.l.bf16 %v3265_v30  ;;  %3052 = vmatprep.subr.msk.bf16.mxu1 %vm3958_vm3, %v3050_v28  ;;  %3058 = vmatprep.subr.msk.bf16.mxu0 %vm3958_vm3, %v3056_v27 }
 0x985   : > { %3055 = vmatpush3.bf16.xpose.msk.msra.mxu1 %vm3958_vm3, %v3050_v28  ;;  %3061 = vmatpush3.bf16.xpose.msk.msra.mxu0 %vm3958_vm3, %v3056_v27 }
 0x986   : > { %v3068_v36 = vpack.c.bf16 %v3272_v31, %v3271_v33  ;;  %v3062_v37 = vpack.c.bf16 %v3267_v34, %v3266_v35 }
 0x987   : > { %v1654_v38 = vpop.permute.xlu1 %1653  ;;  %v1656_v39 = vpop.permute.xlu0 %1655 }
 0x988   : > { %2949 = vmatprep.mubr.msk.f32.mxu0 %vm534_vm2, %v1654_v38  ;;  %3064 = vmatprep.subr.msk.bf16.mxu1 %vm3958_vm3, %v3062_v37 }
 0x989   : > { %3070 = vmatprep.subr.msk.bf16.mxu0 %vm3958_vm3, %v3068_v36 }
 0x98b   : > { %v1745_v40 = vpop.permute.xlu1 %1744  ;;  %v1747_v41 = vpop.permute.xlu0 %1746 }
 0x98c   : > { %2943 = vmatmul.mubr.msk.f32.vlgmr.msra.gmra.mrb[16].mxu1 %vm534_vm2, %v1561_v17  ;;  %2950 = vmatmul.mubr.msk.f32.vlgmr.msra.gmra.mrb[20].mxu0 %vm534_vm2, %v1656_v39 }
 0x98d   : > { %3067 = vmatpush3.bf16.xpose.msk.msra.mxu1 %vm3958_vm3, %v3062_v37  ;;  %2956 = vmatprep.mubr.msk.f32.mxu1 %vm534_vm2, %v1745_v40 }
 0x98e   : > { %3073 = vmatpush3.bf16.xpose.msk.msra.mxu0 %vm3958_vm3, %v3068_v36 }
 0x98f   : > { %v1836_v42 = vpop.permute.xlu1 %1835  ;;  %v1838_v43 = vpop.permute.xlu0 %1837 }
 0x990   : > { %2963 = vmatprep.mubr.msk.f32.mxu0 %vm534_vm2, %v1836_v42 }
 0x994   : > { %2957 = vmatmul.mubr.msk.f32.vlgmr.msra.gmra.mrb[18].mxu1 %vm534_vm2, %v1747_v41 }
 0x995   : > { %2964 = vmatmul.mubr.msk.f32.vlgmr.msra.gmra.mrb[22].mxu0 %vm534_vm2, %v1838_v43 }
 0xa5f   : > { %v2944_v44 = vpop.f32.mrb[16].mxu1  ;;  %v2951_v45 = vpop.f32.mrb[20].mxu0 }
 0xa60   : > { %v1644_v46 = vpop.f32.mrb[17].mxu1  ;;  %v1735_v47 = vpop.f32.mrb[21].mxu0  ;;  %v1929_v48 = vsel %vm891_vm4, %v2944_v44, -inf  ;;  %v1935_v50 = vsel %vm891_vm4, %v2951_v45, -inf }
 0xa61   : > { %1930 = vmax.xlane.f32.xlu0 %v1929_v48  ;;  %v1926_v49 = vsel %vm891_vm4, %v1644_v46, -inf  ;;  %v1932_v32 = vsel %vm891_vm4, %v1735_v47, -inf }
 0xa62   : > { %1927 = vmax.xlane.f32.xlu1 %v1926_v49 }
 0xa65   : > { %1933 = vmax.xlane.f32.xlu0 %v1932_v32 }
 0xa66   : > { %1936 = vmax.xlane.f32.xlu1 %v1935_v50 }
 0xa67   : > { %v2958_v51 = vpop.f32.mrb[18].mxu1 }
 0xa68   : > { %v2965_v52 = vpop.f32.mrb[22].mxu0  ;;  %v1826_v53 = vpop.f32.mrb[19].mxu1  ;;  %v1941_v54 = vsel %vm891_vm4, %v2958_v51, -inf }
 0xa69   : > { %v1917_v55 = vpop.f32.mrb[23].mxu0  ;;  %v1938_v56 = vsel %vm891_vm4, %v1826_v53, -inf  ;;  %v1947_v57 = vsel %vm891_vm4, %v2965_v52, -inf }
 0xa6a   : > { %1942 = vmax.xlane.f32.xlu1 %v1941_v54  ;;  %1939 = vmax.xlane.f32.xlu0 %v1938_v56  ;;  %v1944_v58 = vsel %vm891_vm4, %v1917_v55, -inf }
 0xa6e   : > { %1948 = vmax.xlane.f32.xlu1 %v1947_v57  ;;  %1945 = vmax.xlane.f32.xlu0 %v1944_v58 }
 0xa7f   : > { %3279 = vrot.lane.b32.xlu1 %v4080_v19, %s3624_s11 }
 0xa84   : > { %3274 = vrot.lane.b32.xlu0 %v4080_v19, %s3622_s21  ;;  %s2756_s21 = sshll.u32 %s3697_s9, 8  ;;  %s2533_s9 = scalar_lea.sflag [#allocation4], %s3899_s10 }
 0xaee   : > { %v1931_v59 = vpop.xlane.xlu0 %1930 }
 0xaef   : > { %v1951_v60 = vsub.f32 %v2944_v44, %v1931_v59  ;;  %v1928_v61 = vpop.xlane.xlu1 %1927 }
 0xaf0   : > { %v1950_v62 = vsub.f32 %v1644_v46, %v1928_v61 }
 0xaf1   : > { %v1960_v63 = vmul.f32 1.442695, %v1951_v60 }
 0xaf2   : > { %v1958_v25 = vmul.f32 1.442695, %v1950_v62  ;;  %v1934_v1 = vpop.xlane.xlu0 %1933 }
 0xaf3   : > { %3354 = vpow2.f32 %v1960_v63  ;;  %v1952_v2 = vsub.f32 %v1735_v47, %v1934_v1  ;;  %v1937_v3 = vpop.xlane.xlu1 %1936 }
 0xaf4   : > { %3356 = vpow2.f32 %v1958_v25  ;;  %v1953_v4 = vsub.f32 %v2951_v45, %v1937_v3 }
 0xaf5   : > { %v1962_v15 = vmul.f32 1.442695, %v1952_v2 }
 0xaf6   : > { %v1964_v5 = vmul.f32 1.442695, %v1953_v4 }
 0xaf7   : > { %3358 = vpow2.f32 %v1962_v15  ;;  %v1943_v6 = vpop.xlane.xlu1 %1942  ;;  %v1940_v16 = vpop.xlane.xlu0 %1939 }
 0xaf8   : > { %3360 = vpow2.f32 %v1964_v5  ;;  %v1955_v9 = vsub.f32 %v2958_v51, %v1943_v6  ;;  %v1954_v10 = vsub.f32 %v1826_v53, %v1940_v16 }
 0xafa   : > { %v1968_v11 = vmul.f32 1.442695, %v1955_v9  ;;  %v1966_v12 = vmul.f32 1.442695, %v1954_v10 }
 0xafb   : > { %v1949_v13 = vpop.xlane.xlu1 %1948  ;;  %v1946_v14 = vpop.xlane.xlu0 %1945 }
 0xafc   : > { %3362 = vpow2.f32 %v1968_v11  ;;  %v1957_v17 = vsub.f32 %v2965_v52, %v1949_v13  ;;  %v1956_v18 = vsub.f32 %v1917_v55, %v1946_v14 }
 0xafd   : > { %v3355_v20 = vpop.eup %3354  ;;  %3364 = vpow2.f32 %v1966_v12 }
 0xafe   : > { %v3357_v21 = vpop.eup %3356  ;;  %v1972_v22 = vmul.f32 1.442695, %v1957_v17  ;;  %v1970_v23 = vmul.f32 1.442695, %v1956_v18  ;;  %v1977_v24 = vsel %vm891_vm4, %v3355_v20, 0.0  ;;  %v3318_v17 = vld [vmem:[#allocation8 + $0x10] sm:$0xff]  }
 0xaff   : > { %1978 = vadd.xlane.f32.xlu1 %v1977_v24  ;;  %v3280_v26 = vpop.permute.xlu1 %3279  ;;  %v3275_v27 = vpop.permute.xlu0 %3274  ;;  %v1974_v28 = vsel %vm891_vm4, %v3357_v21, 0.0 }
 0xb00   : > { %3366 = vpow2.f32 %v1972_v22  ;;  %v3277_v29 = vunpack.i.h.bf16 %v3275_v27  ;;  %1975 = vadd.xlane.f32.xlu0 %v1974_v28  ;;  %v3282_v31 = vunpack.i.h.bf16 %v3280_v26  ;;  %v3281_v33 = vunpack.i.l.bf16 %v3280_v26 }
 0xb01   : > { %v3359_v30 = vpop.eup %3358  ;;  %3368 = vpow2.f32 %v1970_v23  ;;  %v3276_v34 = vunpack.i.l.bf16 %v3275_v27 }
 0xb02   : > { %v3361_v35 = vpop.eup %3360  ;;  %v1980_v36 = vsel %vm891_vm4, %v3359_v30, 0.0  ;;  %v3078_v39 = vpack.c.bf16 %v3282_v31, %v3281_v33 }
 0xb03   : > { %v3074_v37 = vpack.c.bf16 %v3277_v29, %v3276_v34  ;;  %v1983_v38 = vsel %vm891_vm4, %v3361_v35, 0.0 }
 0xb04   : > { %1984 = vadd.xlane.f32.xlu1 %v1983_v38  ;;  %1981 = vadd.xlane.f32.xlu0 %v1980_v36 }
 0xb05   : > { %3075 = vmatprep.subr.bf16.mxu1 %v3074_v37 }
 0xb06   : > { %v3363_v40 = vpop.eup %3362  ;;  %3077 = vmatpush3.bf16.msra.mxu1 %v3074_v37 }
 0xb07   : > { %v3365_v41 = vpop.eup %3364  ;;  %3079 = vmatprep.subr.bf16.mxu1 %v3078_v39  ;;  %v1989_v42 = vsel %vm891_vm4, %v3363_v40, 0.0 }
 0xb08   : > { %1990 = vadd.xlane.f32.xlu1 %v1989_v42  ;;  %v1986_v43 = vsel %vm891_vm4, %v3365_v41, 0.0 }
 0xb09   : > { %1987 = vadd.xlane.f32.xlu0 %v1986_v43 }
 0xb0a   : > { %v3367_v44 = vpop.eup %3366 }
 0xb0b   : > { %v3369_v45 = vpop.eup %3368  ;;  %v1995_v46 = vsel %vm891_vm4, %v3367_v44, 0.0 }
 0xb0c   : > { %1996 = vadd.xlane.f32.xlu1 %v1995_v46  ;;  %v1992_v47 = vsel %vm891_vm4, %v3369_v45, 0.0 }
 0xb0d   : > { %1993 = vadd.xlane.f32.xlu0 %v1992_v47 }
 0xb1d   : > { %3284 = vrot.lane.b32.xlu1 %v4080_v19, %s3623_s25 }
 0xb23   : > { %3289 = vrot.lane.b32.xlu0 %v4080_v19, %s3625_s13  ;;  %s4184_s13 = scalar_lea.hbm %s4238_s8, %s2756_s21 }
 0xb8c   : > { %v1979_v48 = vpop.xlane.xlu1 %1978 }
 0xb8d   : > { %3370 = vrcp.f32 %v1979_v48  ;;  %v1976_v49 = vpop.xlane.xlu0 %1975  ;;  %v3320_v48 = vld [vmem:[#allocation10 + $0x10] sm:$0xff]  }
 0xb8e   : > { %3372 = vrcp.f32 %v1976_v49  ;;  %v3321_v49 = vld [vmem:[#allocation10 + $0x18] sm:$0xff]  }
 0xb91   : > { %v1985_v32 = vpop.xlane.xlu1 %1984  ;;  %v1982_v50 = vpop.xlane.xlu0 %1981 }
 0xb92   : > { %3374 = vrcp.f32 %v1985_v32 }
 0xb93   : > { %3376 = vrcp.f32 %v1982_v50 }
 0xb95   : > { %v1991_v51 = vpop.xlane.xlu1 %1990 }
 0xb96   : > { %3378 = vrcp.f32 %v1991_v51  ;;  %v1988_v52 = vpop.xlane.xlu0 %1987 }
 0xb97   : > { %v3371_v53 = vpop.eup %3370  ;;  %3380 = vrcp.f32 %v1988_v52  ;;  %v2746_v52 = vld [vmem:[%s4236_s6 + $0x1] ss:$0 sm:$0xff] }
 0xb98   : > { %v3373_v54 = vpop.eup %3372  ;;  %v2007_v57 = vmul.f32 %v3371_v53, %v3355_v20  ;;  %v3319_v20 = vld [vmem:[#allocation8 + $0x18] sm:$0xff]  }
 0xb99   : > { %v1997_v55 = vpop.xlane.xlu1 %1996  ;;  %v2006_v56 = vmul.f32 %v3373_v54, %v3357_v21 }
 0xb9a   : > { %3382 = vrcp.f32 %v1997_v55  ;;  %v1994_v58 = vpop.xlane.xlu0 %1993 }
 0xb9b   : > { %3384 = vrcp.f32 %v1994_v58  ;;  %2970 = vmatprep.mubr.msk.f32.mxu1 %vm891_vm4, %v2006_v56 }
 0xb9c   : > { %v3375_v19 = vpop.eup %3374  ;;  %2971 = vmatmul.mubr.msk.f32.vlgmr.msra.gmra.mrb[20].mxu1 %vm891_vm4, %v2007_v57 }
 0xb9d   : > { %v3377_v59 = vpop.eup %3376  ;;  %v2009_v60 = vmul.f32 %v3375_v19, %v3361_v35  ;;  %3081 = vmatpush3.bf16.msra.mxu1 %v3078_v39  ;;  %v3285_v61 = vpop.permute.xlu1 %3284 }
 0xb9e   : > { %v3287_v62 = vunpack.i.h.bf16 %v3285_v61  ;;  %v3286_v63 = vunpack.i.l.bf16 %v3285_v61  ;;  %v3290_v25 = vpop.permute.xlu0 %3289  ;;  %v2008_v1 = vmul.f32 %v3377_v59, %v3359_v30 }
 0xb9f   : > { %v3292_v2 = vunpack.i.h.bf16 %v3290_v25  ;;  %v3291_v3 = vunpack.i.l.bf16 %v3290_v25 }
 0xba0   : > { %v3379_v4 = vpop.eup %3378  ;;  %v3082_v15 = vpack.c.bf16 %v3287_v62, %v3286_v63  ;;  %2977 = vmatprep.mubr.msk.f32.mxu1 %vm891_vm4, %v2008_v1 }
 0xba1   : > { %v3381_v5 = vpop.eup %3380  ;;  %v3086_v6 = vpack.c.bf16 %v3292_v2, %v3291_v3  ;;  %2978 = vmatmul.mubr.msk.f32.vlgmr.msra.gmra.mrb[22].mxu1 %vm891_vm4, %v2009_v60  ;;  %v2011_v10 = vmul.f32 %v3379_v4, %v3363_v40 }
 0xba2   : > { %3083 = vmatprep.subr.bf16.mxu0 %v3082_v15  ;;  %v2010_v16 = vmul.f32 %v3381_v5, %v3365_v41 }
 0xba3   : > { %3087 = vmatprep.subr.bf16.mxu1 %v3086_v6  ;;  %3085 = vmatpush3.bf16.msra.mxu0 %v3082_v15 }
 0xba4   : > { %v3383_v9 = vpop.eup %3382  ;;  %2984 = vmatprep.mubr.msk.f32.mxu0 %vm891_vm4, %v2010_v16  ;;  %3089 = vmatpush3.bf16.msra.mxu1 %v3086_v6 }
 0xba5   : > { %v3385_v11 = vpop.eup %3384  ;;  %v2013_v12 = vmul.f32 %v3383_v9, %v3367_v44  ;;  %2994 = vmatprep.subr.bf16.mxu0 %v3613_v0  ;;  %3002 = vmatprep.subr.bf16.mxu1 %v3613_v0 }
 0xba6   : > { %2985 = vmatmul.mubr.msk.f32.vlgmr.msra.gmra.mrb[24].mxu0 %vm891_vm4, %v2011_v10  ;;  %v2012_v13 = vmul.f32 %v3385_v11, %v3369_v45 }
 0xba7   : > { %2998 = vmatprep.mubr.msk.bf16.mxu0 %vm3614_vm0, %v3613_v0  ;;  %2995 = vmatpush3.bf16.msra.mxu0 %v3318_v17 }
 0xba8   : > { %2991 = vmatprep.mubr.msk.f32.mxu1 %vm891_vm4, %v2012_v13  ;;  %2996 = vmatprep.subr.bf16.mxu0 %v3613_v0 }
 0xba9   : > { %2992 = vmatmul.mubr.msk.f32.vlgmr.msra.gmra.mrb[24].mxu1 %vm891_vm4, %v2013_v12 }
 0xbaa   : > { %3006 = vmatprep.mubr.msk.bf16.mxu1 %vm3614_vm0, %v3613_v0  ;;  %3003 = vmatpush3.bf16.msra.mxu1 %v3320_v48 }
 0xbab   : > { %2997 = vmatpush3.bf16.msra.mxu0 %v3319_v20  ;;  %3004 = vmatprep.subr.bf16.mxu1 %v3613_v0 }
 0xbae   : > { %3005 = vmatpush3.bf16.msra.mxu1 %v3321_v49 }
 0xc6f   : > { %v2972_v14 = vpop.f32.mrb[20].mxu1 }
 0xc70   : > { %v2092_v18 = vpop.f32.mrb[21].mxu1 }
 0xc74   : > { %v2979_v21 = vpop.f32.mrb[22].mxu1 }
 0xc75   : > { %v2179_v22 = vpop.f32.mrb[23].mxu1 }
 0xc76   : > { %v3293_v23 = vpack.i.bf16 %v2979_v21, %v2179_v22 }
 0xc78   : > { %3294 = vrot.lane.b32.xlu1 %v3293_v23, %s3626_s14 }
 0xc79   : > { %v2986_v24 = vpop.f32.mrb[24].mxu0 }
 0xc7a   : > { %v2266_v26 = vpop.f32.mrb[25].mxu0 }
 0xc7b   : > { %v3298_v27 = vpack.i.bf16 %v2986_v24, %v2266_v26 }
 0xc7c   : > { %v2993_v28 = vpop.f32.mrb[24].mxu1 }
 0xc7d   : > { %v2353_v29 = vpop.f32.mrb[25].mxu1  ;;  %3299 = vrot.lane.b32.xlu0 %v3298_v27, %s4265_s20  ;;  %s3532_s20 = sshll.u32 %s3629_s15, 4  ;;  %s3533_s20 = int_to_ptr.vmem [resolvable:$false] %s3532_s20 }
 0xc7e   : > { %v3303_v30 = vpack.i.bf16 %v2993_v28, %v2353_v29  ;;  %p3535_p12 = scmp.lt.s32.totalorder %s4178_s12, %s3533_s20 }
 0xc80   : > { %3304 = vrot.lane.b32.xlu1 %v3303_v30, %s4266_s18  ;;  %s3534_s18 = scalar_lea.vmem %s3533_s20, 512 }
 0xc81   : > { %p3536_p1 = scmp.lt.s32.totalorder %s3534_s18, %s3528_s19 }
 0xc83   : > { %p3537_p2 = por %p3536_p1, %p3535_p12 }
 0xc85   : > { %p3538_p13 = pnand %p3537_p2, %p3531_p7 }
 0xcea   : > { %v3295_v31 = vpop.permute.xlu1 %3294 }
 0xceb   : > { %v3297_v33 = vunpack.i.h.bf16 %v3295_v31  ;;  %v3296_v34 = vunpack.i.l.bf16 %v3295_v31 }
 0xced   : > { %v2387_v38 = vsel %vm534_vm2, %v2972_v14, %v3297_v33  ;;  %v2386_v39 = vsel %vm534_vm2, %v2092_v18, %v3296_v34 }
 0xcef   : > { %v3300_v35 = vpop.permute.xlu0 %3299 }
 0xcf0   : > { %v3302_v36 = vunpack.i.h.bf16 %v3300_v35  ;;  %v3301_v37 = vunpack.i.l.bf16 %v3300_v35 }
 0xcf2   : > { %v2388_v40 = vsel %vm891_vm4, %v2386_v39, %v3301_v37  ;;  %v2389_v41 = vsel %vm891_vm4, %v2387_v38, %v3302_v36  ;;  %v3305_v42 = vpop.permute.xlu1 %3304 }
 0xcf3   : > { %v3307_v43 = vunpack.i.h.bf16 %v3305_v42  ;;  %v3306_v44 = vunpack.i.l.bf16 %v3305_v42 }
 0xcf5   : > { %v2391_v45 = vsel %vm1356_vm5, %v2389_v41, %v3307_v43  ;;  %v2390_v46 = vsel %vm1356_vm5, %v2388_v40, %v3306_v44 }
 0xcf6   : > { %v2392_v47 = vpack.c.bf16 %v2391_v45, %v2390_v46 }
 0xcf8   : > { %2999 = vmatmul.mubr.msk.bf16.vlgmr.msra.gmra.mrb[28].mxu0 %vm404_vm1, %v2392_v47 }
 0xdcb   : > { %v2447_v32 = vpop.f32.mrb[28].mxu0 }
 0xdcc   : > { %v2454_v50 = vadd.f32 %v2447_v32, %v4069_v7  ;;  %v3000_v51 = vpop.f32.mrb[29].mxu0 }
 0xdcd   : > { %v2450_v53 = vpop.f32.mrb[30].mxu0 }
 0xdce   : > { %v2455_v54 = vadd.f32 %v2450_v53, %v4071_v8  ;;  %v3001_v55 = vpop.f32.mrb[31].mxu0  ;;  %v2464_v56 = vadd.f32 %v2746_v52, %v2454_v50 }
 0xdd0   : > { %v2465_v57 = vadd.f32 %v2746_v52, %v2455_v54 }
 0xdd2   : > { %v2466_v58 = vpack.c.bf16 %v2465_v57, %v2464_v56 }
 0xdd4   : > { %3007 = vmatmul.mubr.msk.bf16.vlgmr.msra.gmra.mrb[28].mxu1 %vm404_vm1, %v2466_v58 }
 0xea7   : > { %v2521_v0 = vpop.f32.mrb[28].mxu1 }
 0xea8   : > { %v2528_v7 = vadd.f32 %v2521_v0, %v2464_v56  ;;  %v3008_v19 = vpop.f32.mrb[29].mxu1 }
 0xea9   : > { %v2524_v8 = vpop.f32.mrb[30].mxu1 }
 0xeaa   : > { %2530 = vst.msk [vmem:[%s381_s27] sm:$0xff] %vm404_vm1, %v2528_v7  ;;  %v2529_v59 = vadd.f32 %v2524_v8, %v2465_v57  ;;  %v3009_v60 = vpop.f32.mrb[31].mxu1 }
 0xeac   : > { %2531 = vst.msk [vmem:[%s381_s27 + $0x8] sm:$0xff] %vm404_vm1, %v2529_v59 }
 0xead   : > { %3541 = shalt.err (!%p3538_p13)
}
 0xeae   : > { %s3542_s22 = scalar_lea.hbm %s4184_s13, 256  ;;  %s3546_s27 = scalar_lea.hbm %s4238_s8, 512 }
 0xeaf   : > { %p3543_p9 = scmp.ne.s32.totalorder %s4184_s13, %s3542_s22  ;;  %p3547_p4 = scmp.lt.u32.totalorder %s4184_s13, %s4238_s8 }
 0xeb0   : > { %p3548_p8 = scmp.lt.u32.totalorder %s3546_s27, %s3542_s22  ;;  %p3550_p3 = scmp.lt.u32.totalorder %s3542_s22, %s4184_s13 }
 0xeb1   : > { %p3544_p0 = pnand %p3543_p9, %p3847_p10 }
 0xeb2   : > { %p3549_p6 = por %p3548_p8, %p3547_p4 }
 0xeb3   : > { %p3545_p11 = pneg %p3544_p0 }
 0xeb4   : > { %p3551_p5 = por %p3550_p3, %p3549_p6 }
 0xeb6   : > { %p3552_p7 = pnand %p3551_p5, %p3545_p11 }
 0xeb8   : > { %3555 = shalt.err (!%p3552_p7)
}
 0xeb9   : > { %s3630_s11 = smov 128  }
 0xeba   : > { %3108 = dma.vmem_to_hbm [thread:$0]  (%p3847_p10), %s4178_s12, 256, %s4184_s13, %s2533_s9, %s3630_s11, %s3630_s11, %s3626_s14  }
 0xebb PF: > { %s4268_s19 = sld [smem:[#allocation16_spill]]  ;;  %s4269_s15 = sld [smem:[#allocation17_spill]] }
 0xebc   : > { %p4271_p1 = scmp.ge.s32.totalorder %s3602_s30, 2 }
 0xec1   : > { %s2561_s20 = sand.u32 1, %s4268_s19   ;;  %p4270_p12 = scmp.ne.s32.totalorder %s4269_s15, 0 }
 0xec2   : > { %s2562_s18 = scalar_lea.sflag [#allocation4], %s2561_s20 }
 0xec3   : > { %p3128_p2 = pnand %p4271_p1, %p4270_p12 }
 0xec5   : > { %3585 = dma.done.wait (!%p3128_p2), %s2562_s18, 256  }
 0xec6   : > { %3587 = vsyncadd (!%p3128_p2), %s2562_s18, 4294967040  ;;  %p23_p13 = scmp.ge.s32.totalorder %s3837_s26, 4   ;;  %s4272_s27 = smov %s3594_s28 }
 0xec7   : > { %s4273_s28 = smov %s3598_s29  ;;  %s4274_s29 = smov %s3853_s24 }
 0xec8   : > { %s4275_s30 = smov %s3837_s26  ;;  %25 = sbr.rel (!%p23_p13) target bundleno = 7 (0x7), region = 118 }
 0xecf   :  { %2567 = vsyncpa [#allocation3], 1 }
 0xed0   :  { %2569 = vsyncpa [#allocation3 + $0x1], 1 }
 0xed1   :  { %2570 = vsyncpa [#allocation6], 1 }
 0xed2   :  { %2571 = vsyncpa [#allocation9], 1 }
 0xed3   :  { %2572 = vsyncpa [#allocation4], 1 }
 0xed4   :  { %2574 = vsyncpa [#allocation4 + $0x1], 1 }

</bundles_post_ra>
